<compile_context>
chip_gen: v7x
topology: tpu7x:2x2x1
jax: 0.10.0
libtpu: 0.0.40
codegen_flags: <defaults>
</compile_context>

<pallas_src>
import jax
import jax.numpy as jnp
from jax import lax
from jax.experimental import pallas as pl
from jax.experimental.pallas import tpu as pltpu

# Set to jnp.bfloat16 on v6e/v7x for higher MXU throughput (accumulation stays
# float32 via preferred_element_type).  Kept float32 here so the forward pass
# matches the PyTorch module's numerics.
MATMUL_DTYPE = jnp.float32


def _mm(a, b):
    return jnp.dot(a.astype(MATMUL_DTYPE), b.astype(MATMUL_DTYPE),
                   preferred_element_type=jnp.float32)


def _lstm_step(xh, w_ref, b_ref, c, hdim):
    """One LSTM step with the fused [input, hidden] @ [Wih; Whh] matmul.

    Gate layout follows PyTorch: [i | f | g | o].  The single bias equals the
    sum b_ih + b_hh of the PyTorch parameters.
    """
    g = _mm(xh, w_ref[...]) + b_ref[...]
    i = jax.nn.sigmoid(g[:, 0 * hdim:1 * hdim])
    f = jax.nn.sigmoid(g[:, 1 * hdim:2 * hdim])
    n = jnp.tanh(g[:, 2 * hdim:3 * hdim])
    o = jax.nn.sigmoid(g[:, 3 * hdim:4 * hdim])
    c_new = f * c + i * n
    h_new = o * jnp.tanh(c_new)
    return h_new, c_new


# --------------------------------------------------------------------------
# Encoder: BiLSTM + pBLSTM x3 + fused key/value projection in ONE kernel.
# Layout inside the kernel is time-major (T, B, D); per-layer fwd/bwd hidden
# sequences live in VMEM scratch.
# --------------------------------------------------------------------------
def _encoder_kernel(x_ref,
                    w0f, b0f, w0b, b0b,
                    w1f, b1f, w1b, b1b,
                    w2f, b2f, w2b, b2b,
                    w3f, b3f, w3b, b3b,
                    wkv_ref, bkv_ref,
                    key_ref, val_ref,
                    sf0, sb0, sf1, sb1, sf2, sb2, sf3, sb3):
    B = x_ref.shape[1]
    H = w0f.shape[1] // 4
    KD = key_ref.shape[2]

    def run_bilstm(read, wf, bf, wb, bb, outf, outb):
        # Forward and backward directions share one sequential loop; the
        # backward direction reads the reversed sequence via index arithmetic.
        t_len = outf.shape[0]

        def body(t, carry):
            hf, cf, hb, cb = carry
            rt = t_len - 1 - t
            hf, cf = _lstm_step(jnp.concatenate([read(t), hf], axis=1),
                                wf, bf, cf, H)
            hb, cb = _lstm_step(jnp.concatenate([read(rt), hb], axis=1),
                                wb, bb, cb, H)
            outf[t, :, :] = hf
            outb[rt, :, :] = hb
            return hf, cf, hb, cb

        z = jnp.zeros((B, H), jnp.float32)
        lax.fori_loop(0, t_len, body, (z, z, z, z))

    def pair_read(prev_f, prev_b):
        # pBLSTM time-pooling: input at reduced step s is the concat of the
        # previous layer's BiLSTM outputs at original steps 2s and 2s+1.
        def read(s):
            return jnp.concatenate(
                [prev_f[2 * s, :, :], prev_b[2 * s, :, :],
                 prev_f[2 * s + 1, :, :], prev_b[2 * s + 1, :, :]], axis=1)
        return read

    # TODO(synk): pack_padded_sequence per-example length handling is not
    # reproduced; full-length sequences are assumed (both coincide here).
    run_bilstm(lambda t: x_ref[t, :, :], w0f, b0f, w0b, b0b, sf0, sb0)
    run_bilstm(pair_read(sf0, sb0), w1f, b1f, w1b, b1b, sf1, sb1)
    run_bilstm(pair_read(sf1, sb1), w2f, b2f, w2b, b2b, sf2, sb2)
    run_bilstm(pair_read(sf2, sb2), w3f, b3f, w3b, b3b, sf3, sb3)

    # Fused key/value projection: [h_f, h_b] @ [Wk | Wv] + [bk | bv].
    def proj(s, carry):
        h = jnp.concatenate([sf3[s, :, :], sb3[s, :, :]], axis=1)   # (B, 2H)
        kv = _mm(h, wkv_ref[...]) + bkv_ref[...]                    # (B, KD+VD)
        key_ref[s, :, :] = kv[:, :KD]
        val_ref[s, :, :] = kv[:, KD:]
        return carry

    lax.fori_loop(0, key_ref.shape[0], proj, 0)


def encoder_forward(ep, x_btd, lens):
    del lens  # see TODO in _encoder_kernel (full-length sequences assumed)
    x_tbd = jnp.transpose(x_btd, (1, 0, 2))            # time-major (T, B, D)
    T, B, _ = x_tbd.shape
    H = ep["l0"]["wf"].shape[1] // 4
    KD, VD = ep["key_dim"], ep["val_dim"]
    T1, T2, T3 = T // 2, (T // 2) // 2, ((T // 2) // 2) // 2

    vmem = lambda: pl.BlockSpec(memory_space=pltpu.MemorySpace.VMEM)
    scratch = [pltpu.VMEM((tl, B, H), jnp.float32)
               for tl in (T, T, T1, T1, T2, T2, T3, T3)]

    key_t, val_t = pl.pallas_call(
        _encoder_kernel,
        out_shape=(jax.ShapeDtypeStruct((T3, B, KD), jnp.float32),
                   jax.ShapeDtypeStruct((T3, B, VD), jnp.float32)),
        in_specs=[vmem() for _ in range(19)],
        out_specs=(vmem(), vmem()),
        scratch_shapes=scratch,
    )(x_tbd,
      ep["l0"]["wf"], ep["l0"]["bf"], ep["l0"]["wb"], ep["l0"]["bb"],
      ep["l1"]["wf"], ep["l1"]["bf"], ep["l1"]["wb"], ep["l1"]["bb"],
      ep["l2"]["wf"], ep["l2"]["bf"], ep["l2"]["wb"], ep["l2"]["bb"],
      ep["l3"]["wf"], ep["l3"]["bf"], ep["l3"]["wb"], ep["l3"]["bb"],
      ep["wkv"], ep["bkv"])

    # Batch-major (B, Tenc, feat) for the decoder's batched attention matmuls
    # (tiny copies at these sizes).
    return jnp.transpose(key_t, (1, 0, 2)), jnp.transpose(val_t, (1, 0, 2))


# --------------------------------------------------------------------------
# Decoder: the whole (max_len - 1) autoregressive loop in ONE kernel.
# --------------------------------------------------------------------------
def _decoder_kernel(emb_ref, key_ref, val_ref, mask_ref,
                    w1_ref, b1_ref, w2_ref, b2_ref, wp_ref, bp_ref,
                    pred_ref, attn_ref):
    steps, B, H = emb_ref.shape
    KH = w2_ref.shape[1] // 4          # lstm2 hidden size (query dim)
    VD = val_ref.shape[2]              # context / value feature size

    def body(t, carry):
        h1, c1, h2, c2, ctx = carry

        # TODO(synk): stochastic teacher forcing (torch.rand / gumbel_softmax)
        # and the isTrain=False greedy branch are not reproduced; the kernel
        # always teacher-forces with the ground-truth embedding.
        char_embed = emb_ref[t, :, :]                                  # (B, H)

        # LSTMCell 1: one fused matmul over [char_embed, context, h1].
        h1, c1 = _lstm_step(jnp.concatenate([char_embed, ctx, h1], axis=1),
                            w1_ref, b1_ref, c1, H)
        # LSTMCell 2: one fused matmul over [h1, h2].
        h2, c2 = _lstm_step(jnp.concatenate([h1, h2], axis=1),
                            w2_ref, b2_ref, c2, KH)
        output = h2                                                    # (B, KH)

        # Attention on the MXU (batched matmuls, flash-attention pattern).
        energy = jnp.einsum('bqd,bkd->bqk', output[:, None, :], key_ref[...],
                            preferred_element_type=jnp.float32)[:, 0, :]  # (B, Tenc)
        # Fused masked softmax == softmax -> mask -> renormalize of the
        # reference (the unmasked partition function cancels); denominator is
        # clamped so an all-masked row cannot produce NaN.
        e = jnp.exp(energy - jnp.max(energy, axis=1, keepdims=True)) * mask_ref[...]
        denom = jnp.maximum(jnp.sum(e, axis=1, keepdims=True), 1e-20)
        na = e * pl.reciprocal(denom, approx=True)
        ctx = jnp.einsum('bqk,bkd->bqd', na[:, None, :], val_ref[...],
                         preferred_element_type=jnp.float32)[:, 0, :]     # (B, VD)

        # character_prob: one fused matmul over [output, context].
        pred = _mm(jnp.concatenate([output, ctx], axis=1), wp_ref[...]) + bp_ref[...]
        pred_ref[t, :, :] = pred
        attn_ref[t, :, :] = na
        return h1, c1, h2, c2, ctx

    z = lambda n: jnp.zeros((B, n), jnp.float32)
    lax.fori_loop(0, steps, body, (z(H), z(H), z(KH), z(KH), z(VD)),
                  unroll=True)


def decoder_forward(dp, key_enc, value_enc, mask, text):
    B, max_len = text.shape
    steps = max_len - 1
    vocab = dp["wp"].shape[1]
    Tenc = key_enc.shape[1]

    # Embedding lookup kept as tiny JAX glue (teacher-forced inputs only).
    emb_steps = jnp.transpose(dp["emb"][text[:, :steps]], (1, 0, 2))   # (steps, B, H)

    vmem = lambda: pl.BlockSpec(memory_space=pltpu.MemorySpace.VMEM)
    pred_t, attn_t = pl.pallas_call(
        _decoder_kernel,
        out_shape=(jax.ShapeDtypeStruct((steps, B, vocab), jnp.float32),
                   jax.ShapeDtypeStruct((steps, B, Tenc), jnp.float32)),
        in_specs=[vmem() for _ in range(10)],
        out_specs=(vmem(), vmem()),
    )(emb_steps, key_enc, value_enc, mask,
      dp["w1"], dp["b1"], dp["w2"], dp["b2"], dp["wp"], dp["bp"])

    predictions = jnp.transpose(pred_t, (1, 0, 2))        # (B, steps, vocab)
    return predictions, attn_t


def seq2seq_forward(params, speech_input, speech_len, text_input):
    key_enc, value_enc = encoder_forward(params["enc"], speech_input, speech_len)
    Tenc = key_enc.shape[1]
    # Reproduces the reference quirk: raw speech_len is compared against the
    # 8x-downsampled encoder positions (mask is all-True when len >= Tenc).
    mask = (jnp.arange(Tenc)[None, :] < speech_len[:, None]).astype(jnp.float32)
    return decoder_forward(params["dec"], key_enc, value_enc, mask, text_input)


# --------------------------------------------------------------------------
# Deterministic synthetic parameters (fused-weight layout, shapes follow the
# PyTorch __init__; single bias = b_ih + b_hh).
# --------------------------------------------------------------------------
def _init_bidir(key, in_dim, hid, scale=0.1):
    kf1, kf2, kb1, kb2 = jax.random.split(key, 4)
    return dict(
        wf=scale * jax.random.normal(kf1, (in_dim + hid, 4 * hid), jnp.float32),
        bf=scale * jax.random.normal(kf2, (1, 4 * hid), jnp.float32),
        wb=scale * jax.random.normal(kb1, (in_dim + hid, 4 * hid), jnp.float32),
        bb=scale * jax.random.normal(kb2, (1, 4 * hid), jnp.float32))


def init_params(key, input_dim, vocab_size, hidden_dim, value_size, key_size):
    s = 0.1
    keys = jax.random.split(key, 16)
    H = hidden_dim
    enc = dict(
        l0=_init_bidir(keys[0], input_dim, H),
        l1=_init_bidir(keys[1], 4 * H, H),
        l2=_init_bidir(keys[2], 4 * H, H),
        l3=_init_bidir(keys[3], 4 * H, H),
        # Fused key/value heads: [Wk | Wv], Wk: (2H, value_size) key features,
        # Wv: (2H, key_size) value features (PyTorch key_network/value_network).
        wkv=s * jax.random.normal(keys[4], (2 * H, value_size + key_size), jnp.float32),
        bkv=s * jax.random.normal(keys[5], (1, value_size + key_size), jnp.float32),
        key_dim=value_size,
        val_dim=key_size)
    emb = s * jax.random.normal(keys[6], (vocab_size, H), jnp.float32)
    emb = emb.at[0].set(0.0)                    # padding_idx=0
    dec = dict(
        emb=emb,
        # LSTMCell1 fused over [char_embed (H), context (value_size), h1 (H)]
        w1=s * jax.random.normal(keys[7], (H + value_size + H, 4 * H), jnp.float32),
        b1=s * jax.random.normal(keys[8], (1, 4 * H), jnp.float32),
        # LSTMCell2 fused over [h1 (H), h2 (key_size)]
        w2=s * jax.random.normal(keys[9], (H + key_size, 4 * key_size), jnp.float32),
        b2=s * jax.random.normal(keys[10], (1, 4 * key_size), jnp.float32),
        # character_prob fused over [output (key_size), context (value_size)]
        wp=s * jax.random.normal(keys[11], (key_size + value_size, vocab_size), jnp.float32),
        bp=s * jax.random.normal(keys[12], (1, vocab_size), jnp.float32))
    return dict(enc=enc, dec=dec)


if __name__ == "__main__":
    B, T, INPUT_DIM = 2, 32, 8
    HIDDEN, VALUE, KEY_SZ = 32, 32, 32
    VOCAB, MAX_LEN = 48, 8

    root = jax.random.PRNGKey(0)
    kp, kx, kt = jax.random.split(root, 3)
    params = init_params(kp, INPUT_DIM, VOCAB, HIDDEN, VALUE, KEY_SZ)

    speech = jax.random.normal(kx, (B, T, INPUT_DIM), jnp.float32)
    speech_len = jnp.array([T, T], dtype=jnp.int32)
    text = jax.random.randint(kt, (B, MAX_LEN), 1, VOCAB, dtype=jnp.int32)

    preds, attn_maps = seq2seq_forward(params, speech, speech_len, text)
    jax.block_until_ready((preds, attn_maps))

    assert preds.shape == (B, MAX_LEN - 1, VOCAB), preds.shape
    assert attn_maps.shape == (MAX_LEN - 1, B, T // 8), attn_maps.shape
    assert bool(jnp.all(jnp.isfinite(preds)))
    print("KERNEL_OK")
</pallas_src>

<mosaic_0001>
module attributes {stable_mosaic.version = 11 : i64} {
  func.func @_encoder_kernel(%arg0: memref<32x2x8xf32, #tpu.memory_space<vmem>>, %arg1: memref<40x128xf32, #tpu.memory_space<vmem>>, %arg2: memref<1x128xf32, #tpu.memory_space<vmem>>, %arg3: memref<40x128xf32, #tpu.memory_space<vmem>>, %arg4: memref<1x128xf32, #tpu.memory_space<vmem>>, %arg5: memref<160x128xf32, #tpu.memory_space<vmem>>, %arg6: memref<1x128xf32, #tpu.memory_space<vmem>>, %arg7: memref<160x128xf32, #tpu.memory_space<vmem>>, %arg8: memref<1x128xf32, #tpu.memory_space<vmem>>, %arg9: memref<160x128xf32, #tpu.memory_space<vmem>>, %arg10: memref<1x128xf32, #tpu.memory_space<vmem>>, %arg11: memref<160x128xf32, #tpu.memory_space<vmem>>, %arg12: memref<1x128xf32, #tpu.memory_space<vmem>>, %arg13: memref<160x128xf32, #tpu.memory_space<vmem>>, %arg14: memref<1x128xf32, #tpu.memory_space<vmem>>, %arg15: memref<160x128xf32, #tpu.memory_space<vmem>>, %arg16: memref<1x128xf32, #tpu.memory_space<vmem>>, %arg17: memref<64x64xf32, #tpu.memory_space<vmem>>, %arg18: memref<1x64xf32, #tpu.memory_space<vmem>>, %arg19: memref<4x2x32xf32, #tpu.memory_space<vmem>>, %arg20: memref<4x2x32xf32, #tpu.memory_space<vmem>>, %arg21: memref<32x2x32xf32, #tpu.memory_space<vmem>>, %arg22: memref<32x2x32xf32, #tpu.memory_space<vmem>>, %arg23: memref<16x2x32xf32, #tpu.memory_space<vmem>>, %arg24: memref<16x2x32xf32, #tpu.memory_space<vmem>>, %arg25: memref<8x2x32xf32, #tpu.memory_space<vmem>>, %arg26: memref<8x2x32xf32, #tpu.memory_space<vmem>>, %arg27: memref<4x2x32xf32, #tpu.memory_space<vmem>>, %arg28: memref<4x2x32xf32, #tpu.memory_space<vmem>>) attributes {dimension_semantics = [], scalar_prefetch = 0 : i64, scratch_operands = 8 : i64, tpu.core_type = #tpu.core_type<tc>} {
    %cst = arith.constant 0.000000e+00 : f32
    %0 = vector.broadcast %cst : f32 to vector<2x32xf32>
    %c0_i32 = arith.constant 0 : i32
    %c32_i32 = arith.constant 32 : i32
    %1 = arith.addi %c0_i32, %c32_i32 : i32
    %c1_i32 = arith.constant 1 : i32
    %2:4 = scf.for %arg29 = %c0_i32 to %1 step %c1_i32 iter_args(%arg30 = %0, %arg31 = %0, %arg32 = %0, %arg33 = %0) -> (vector<2x32xf32>, vector<2x32xf32>, vector<2x32xf32>, vector<2x32xf32>)  : i32 {
      %c31_i32 = arith.constant 31 : i32
      %13 = arith.subi %c31_i32, %arg29 : i32
      %14 = arith.index_cast %arg29 : i32 to index
      %c0 = arith.constant 0 : index
      %c0_17 = arith.constant 0 : index
      %15 = vector.load %arg0[%14, %c0, %c0_17] : memref<32x2x8xf32, #tpu.memory_space<vmem>>, vector<1x2x8xf32>
      %16 = vector.shape_cast %15 : vector<1x2x8xf32> to vector<2x8xf32>
      %17 = tpu.concatenate %16, %arg30 in 1 : vector<2x8xf32>, vector<2x32xf32> -> vector<2x40xf32>
      %c0_18 = arith.constant 0 : index
      %c0_19 = arith.constant 0 : index
      %18 = vector.load %arg1[%c0_18, %c0_19] : memref<40x128xf32, #tpu.memory_space<vmem>>, vector<40x128xf32>
      %cst_20 = arith.constant dense<0.000000e+00> : vector<2x128xf32>
      %19 = tpu.matmul %17, %18, %cst_20 {dimension_numbers = #tpu.dot_dimension_numbers<[1], [0], [0], [1], [0, 0, 1, 1], [], []>} : vector<2x40xf32>, vector<40x128xf32>, vector<2x128xf32> -> vector<2x128xf32>
      %c0_21 = arith.constant 0 : index
      %c0_22 = arith.constant 0 : index
      %20 = vector.load %arg2[%c0_21, %c0_22] : memref<1x128xf32, #tpu.memory_space<vmem>>, vector<1x128xf32>
      %21 = vector.broadcast %20 : vector<1x128xf32> to vector<2x128xf32>
      %22 = arith.addf %19, %21 : vector<2x128xf32>
      %23 = vector.extract_strided_slice %22 {offsets = [0, 0], sizes = [2, 32], strides = [1, 1]} : vector<2x128xf32> to vector<2x32xf32>
      %24 = arith.negf %23 : vector<2x32xf32>
      %25 = math.exp %24 : vector<2x32xf32>
      %cst_23 = arith.constant 1.000000e+00 : f32
      %26 = vector.broadcast %cst_23 : f32 to vector<2x32xf32>
      %27 = arith.addf %26, %25 : vector<2x32xf32>
      %28 = arith.divf %26, %27 : vector<2x32xf32>
      %29 = vector.extract_strided_slice %22 {offsets = [0, 32], sizes = [2, 32], strides = [1, 1]} : vector<2x128xf32> to vector<2x32xf32>
      %30 = arith.negf %29 : vector<2x32xf32>
      %31 = math.exp %30 : vector<2x32xf32>
      %cst_24 = arith.constant 1.000000e+00 : f32
      %32 = vector.broadcast %cst_24 : f32 to vector<2x32xf32>
      %33 = arith.addf %32, %31 : vector<2x32xf32>
      %34 = arith.divf %32, %33 : vector<2x32xf32>
      %35 = vector.extract_strided_slice %22 {offsets = [0, 64], sizes = [2, 32], strides = [1, 1]} : vector<2x128xf32> to vector<2x32xf32>
      %36 = math.tanh %35 : vector<2x32xf32>
      %37 = vector.extract_strided_slice %22 {offsets = [0, 96], sizes = [2, 32], strides = [1, 1]} : vector<2x128xf32> to vector<2x32xf32>
      %38 = arith.negf %37 : vector<2x32xf32>
      %39 = math.exp %38 : vector<2x32xf32>
      %cst_25 = arith.constant 1.000000e+00 : f32
      %40 = vector.broadcast %cst_25 : f32 to vector<2x32xf32>
      %41 = arith.addf %40, %39 : vector<2x32xf32>
      %42 = arith.divf %40, %41 : vector<2x32xf32>
      %43 = arith.mulf %34, %arg31 : vector<2x32xf32>
      %44 = arith.mulf %28, %36 : vector<2x32xf32>
      %45 = arith.addf %43, %44 : vector<2x32xf32>
      %46 = math.tanh %45 : vector<2x32xf32>
      %47 = arith.mulf %42, %46 : vector<2x32xf32>
      %48 = arith.index_cast %13 : i32 to index
      %c0_26 = arith.constant 0 : index
      %c0_27 = arith.constant 0 : index
      %49 = vector.load %arg0[%48, %c0_26, %c0_27] : memref<32x2x8xf32, #tpu.memory_space<vmem>>, vector<1x2x8xf32>
      %50 = vector.shape_cast %49 : vector<1x2x8xf32> to vector<2x8xf32>
      %51 = tpu.concatenate %50, %arg32 in 1 : vector<2x8xf32>, vector<2x32xf32> -> vector<2x40xf32>
      %c0_28 = arith.constant 0 : index
      %c0_29 = arith.constant 0 : index
      %52 = vector.load %arg3[%c0_28, %c0_29] : memref<40x128xf32, #tpu.memory_space<vmem>>, vector<40x128xf32>
      %cst_30 = arith.constant dense<0.000000e+00> : vector<2x128xf32>
      %53 = tpu.matmul %51, %52, %cst_30 {dimension_numbers = #tpu.dot_dimension_numbers<[1], [0], [0], [1], [0, 0, 1, 1], [], []>} : vector<2x40xf32>, vector<40x128xf32>, vector<2x128xf32> -> vector<2x128xf32>
      %c0_31 = arith.constant 0 : index
      %c0_32 = arith.constant 0 : index
      %54 = vector.load %arg4[%c0_31, %c0_32] : memref<1x128xf32, #tpu.memory_space<vmem>>, vector<1x128xf32>
      %55 = vector.broadcast %54 : vector<1x128xf32> to vector<2x128xf32>
      %56 = arith.addf %53, %55 : vector<2x128xf32>
      %57 = vector.extract_strided_slice %56 {offsets = [0, 0], sizes = [2, 32], strides = [1, 1]} : vector<2x128xf32> to vector<2x32xf32>
      %58 = arith.negf %57 : vector<2x32xf32>
      %59 = math.exp %58 : vector<2x32xf32>
      %cst_33 = arith.constant 1.000000e+00 : f32
      %60 = vector.broadcast %cst_33 : f32 to vector<2x32xf32>
      %61 = arith.addf %60, %59 : vector<2x32xf32>
      %62 = arith.divf %60, %61 : vector<2x32xf32>
      %63 = vector.extract_strided_slice %56 {offsets = [0, 32], sizes = [2, 32], strides = [1, 1]} : vector<2x128xf32> to vector<2x32xf32>
      %64 = arith.negf %63 : vector<2x32xf32>
      %65 = math.exp %64 : vector<2x32xf32>
      %cst_34 = arith.constant 1.000000e+00 : f32
      %66 = vector.broadcast %cst_34 : f32 to vector<2x32xf32>
      %67 = arith.addf %66, %65 : vector<2x32xf32>
      %68 = arith.divf %66, %67 : vector<2x32xf32>
      %69 = vector.extract_strided_slice %56 {offsets = [0, 64], sizes = [2, 32], strides = [1, 1]} : vector<2x128xf32> to vector<2x32xf32>
      %70 = math.tanh %69 : vector<2x32xf32>
      %71 = vector.extract_strided_slice %56 {offsets = [0, 96], sizes = [2, 32], strides = [1, 1]} : vector<2x128xf32> to vector<2x32xf32>
      %72 = arith.negf %71 : vector<2x32xf32>
      %73 = math.exp %72 : vector<2x32xf32>
      %cst_35 = arith.constant 1.000000e+00 : f32
      %74 = vector.broadcast %cst_35 : f32 to vector<2x32xf32>
      %75 = arith.addf %74, %73 : vector<2x32xf32>
      %76 = arith.divf %74, %75 : vector<2x32xf32>
      %77 = arith.mulf %68, %arg33 : vector<2x32xf32>
      %78 = arith.mulf %62, %70 : vector<2x32xf32>
      %79 = arith.addf %77, %78 : vector<2x32xf32>
      %80 = math.tanh %79 : vector<2x32xf32>
      %81 = arith.mulf %76, %80 : vector<2x32xf32>
      %82 = arith.index_cast %arg29 : i32 to index
      %c0_36 = arith.constant 0 : index
      %c0_37 = arith.constant 0 : index
      %83 = vector.load %arg21[%82, %c0_36, %c0_37] : memref<32x2x32xf32, #tpu.memory_space<vmem>>, vector<1x2x32xf32>
      %84 = vector.shape_cast %83 : vector<1x2x32xf32> to vector<2x32xf32>
      %85 = vector.shape_cast %47 : vector<2x32xf32> to vector<1x2x32xf32>
      tpu.vector_store %arg21[%82, %c0_36, %c0_37], %85 {strides = array<i32>} : memref<32x2x32xf32, #tpu.memory_space<vmem>>, vector<1x2x32xf32>,
      %86 = arith.index_cast %13 : i32 to index
      %c0_38 = arith.constant 0 : index
      %c0_39 = arith.constant 0 : index
      %87 = vector.load %arg22[%86, %c0_38, %c0_39] : memref<32x2x32xf32, #tpu.memory_space<vmem>>, vector<1x2x32xf32>
      %88 = vector.shape_cast %87 : vector<1x2x32xf32> to vector<2x32xf32>
      %89 = vector.shape_cast %81 : vector<2x32xf32> to vector<1x2x32xf32>
      tpu.vector_store %arg22[%86, %c0_38, %c0_39], %89 {strides = array<i32>} : memref<32x2x32xf32, #tpu.memory_space<vmem>>, vector<1x2x32xf32>,
      scf.yield %47, %45, %81, %79 : vector<2x32xf32>, vector<2x32xf32>, vector<2x32xf32>, vector<2x32xf32>
    }
    %c32_i32_0 = arith.constant 32 : i32
    %cst_1 = arith.constant 0.000000e+00 : f32
    %3 = vector.broadcast %cst_1 : f32 to vector<2x32xf32>
    %c0_i32_2 = arith.constant 0 : i32
    %c16_i32 = arith.constant 16 : i32
    %4 = arith.addi %c0_i32_2, %c16_i32 : i32
    %c1_i32_3 = arith.constant 1 : i32
    %5:4 = scf.for %arg29 = %c0_i32_2 to %4 step %c1_i32_3 iter_args(%arg30 = %3, %arg31 = %3, %arg32 = %3, %arg33 = %3) -> (vector<2x32xf32>, vector<2x32xf32>, vector<2x32xf32>, vector<2x32xf32>)  : i32 {
      %c15_i32 = arith.constant 15 : i32
      %13 = arith.subi %c15_i32, %arg29 : i32
      %c2_i32 = arith.constant 2 : i32
      %14 = arith.muli %c2_i32, %arg29 : i32
      %15 = arith.index_cast %14 : i32 to index
      %c0 = arith.constant 0 : index
      %c0_17 = arith.constant 0 : index
      %16 = vector.load %arg21[%15, %c0, %c0_17] : memref<32x2x32xf32, #tpu.memory_space<vmem>>, vector<1x2x32xf32>
      %17 = vector.shape_cast %16 : vector<1x2x32xf32> to vector<2x32xf32>
      %c2_i32_18 = arith.constant 2 : i32
      %18 = arith.muli %c2_i32_18, %arg29 : i32
      %19 = arith.index_cast %18 : i32 to index
      %c0_19 = arith.constant 0 : index
      %c0_20 = arith.constant 0 : index
      %20 = vector.load %arg22[%19, %c0_19, %c0_20] : memref<32x2x32xf32, #tpu.memory_space<vmem>>, vector<1x2x32xf32>
      %21 = vector.shape_cast %20 : vector<1x2x32xf32> to vector<2x32xf32>
      %c2_i32_21 = arith.constant 2 : i32
      %22 = arith.muli %c2_i32_21, %arg29 : i32
      %c1_i32_22 = arith.constant 1 : i32
      %23 = arith.addi %22, %c1_i32_22 : i32
      %24 = arith.index_cast %23 : i32 to index
      %c0_23 = arith.constant 0 : index
      %c0_24 = arith.constant 0 : index
      %25 = vector.load %arg21[%24, %c0_23, %c0_24] : memref<32x2x32xf32, #tpu.memory_space<vmem>>, vector<1x2x32xf32>
      %26 = vector.shape_cast %25 : vector<1x2x32xf32> to vector<2x32xf32>
      %c2_i32_25 = arith.constant 2 : i32
      %27 = arith.muli %c2_i32_25, %arg29 : i32
      %c1_i32_26 = arith.constant 1 : i32
      %28 = arith.addi %27, %c1_i32_26 : i32
      %29 = arith.index_cast %28 : i32 to index
      %c0_27 = arith.constant 0 : index
      %c0_28 = arith.constant 0 : index
      %30 = vector.load %arg22[%29, %c0_27, %c0_28] : memref<32x2x32xf32, #tpu.memory_space<vmem>>, vector<1x2x32xf32>
      %31 = vector.shape_cast %30 : vector<1x2x32xf32> to vector<2x32xf32>
      %32 = tpu.concatenate %17, %21, %26, %31 in 1 : vector<2x32xf32>, vector<2x32xf32>, vector<2x32xf32>, vector<2x32xf32> -> vector<2x128xf32>
      %33 = tpu.concatenate %32, %arg30 in 1 : vector<2x128xf32>, vector<2x32xf32> -> vector<2x160xf32>
      %c0_29 = arith.constant 0 : index
      %c0_30 = arith.constant 0 : index
      %34 = vector.load %arg5[%c0_29, %c0_30] : memref<160x128xf32, #tpu.memory_space<vmem>>, vector<160x128xf32>
      %cst_31 = arith.constant dense<0.000000e+00> : vector<2x128xf32>
      %35 = tpu.matmul %33, %34, %cst_31 {dimension_numbers = #tpu.dot_dimension_numbers<[1], [0], [0], [1], [0, 0, 1, 1], [], []>} : vector<2x160xf32>, vector<160x128xf32>, vector<2x128xf32> -> vector<2x128xf32>
      %c0_32 = arith.constant 0 : index
      %c0_33 = arith.constant 0 : index
      %36 = vector.load %arg6[%c0_32, %c0_33] : memref<1x128xf32, #tpu.memory_space<vmem>>, vector<1x128xf32>
      %37 = vector.broadcast %36 : vector<1x128xf32> to vector<2x128xf32>
      %38 = arith.addf %35, %37 : vector<2x128xf32>
      %39 = vector.extract_strided_slice %38 {offsets = [0, 0], sizes = [2, 32], strides = [1, 1]} : vector<2x128xf32> to vector<2x32xf32>
      %40 = arith.negf %39 : vector<2x32xf32>
      %41 = math.exp %40 : vector<2x32xf32>
      %cst_34 = arith.constant 1.000000e+00 : f32
      %42 = vector.broadcast %cst_34 : f32 to vector<2x32xf32>
      %43 = arith.addf %42, %41 : vector<2x32xf32>
      %44 = arith.divf %42, %43 : vector<2x32xf32>
      %45 = vector.extract_strided_slice %38 {offsets = [0, 32], sizes = [2, 32], strides = [1, 1]} : vector<2x128xf32> to vector<2x32xf32>
      %46 = arith.negf %45 : vector<2x32xf32>
      %47 = math.exp %46 : vector<2x32xf32>
      %cst_35 = arith.constant 1.000000e+00 : f32
      %48 = vector.broadcast %cst_35 : f32 to vector<2x32xf32>
      %49 = arith.addf %48, %47 : vector<2x32xf32>
      %50 = arith.divf %48, %49 : vector<2x32xf32>
      %51 = vector.extract_strided_slice %38 {offsets = [0, 64], sizes = [2, 32], strides = [1, 1]} : vector<2x128xf32> to vector<2x32xf32>
      %52 = math.tanh %51 : vector<2x32xf32>
      %53 = vector.extract_strided_slice %38 {offsets = [0, 96], sizes = [2, 32], strides = [1, 1]} : vector<2x128xf32> to vector<2x32xf32>
      %54 = arith.negf %53 : vector<2x32xf32>
      %55 = math.exp %54 : vector<2x32xf32>
      %cst_36 = arith.constant 1.000000e+00 : f32
      %56 = vector.broadcast %cst_36 : f32 to vector<2x32xf32>
      %57 = arith.addf %56, %55 : vector<2x32xf32>
      %58 = arith.divf %56, %57 : vector<2x32xf32>
      %59 = arith.mulf %50, %arg31 : vector<2x32xf32>
      %60 = arith.mulf %44, %52 : vector<2x32xf32>
      %61 = arith.addf %59, %60 : vector<2x32xf32>
      %62 = math.tanh %61 : vector<2x32xf32>
      %63 = arith.mulf %58, %62 : vector<2x32xf32>
      %c2_i32_37 = arith.constant 2 : i32
      %64 = arith.muli %c2_i32_37, %13 : i32
      %65 = arith.index_cast %64 : i32 to index
      %c0_38 = arith.constant 0 : index
      %c0_39 = arith.constant 0 : index
      %66 = vector.load %arg21[%65, %c0_38, %c0_39] : memref<32x2x32xf32, #tpu.memory_space<vmem>>, vector<1x2x32xf32>
      %67 = vector.shape_cast %66 : vector<1x2x32xf32> to vector<2x32xf32>
      %c2_i32_40 = arith.constant 2 : i32
      %68 = arith.muli %c2_i32_40, %13 : i32
      %69 = arith.index_cast %68 : i32 to index
      %c0_41 = arith.constant 0 : index
      %c0_42 = arith.constant 0 : index
      %70 = vector.load %arg22[%69, %c0_41, %c0_42] : memref<32x2x32xf32, #tpu.memory_space<vmem>>, vector<1x2x32xf32>
      %71 = vector.shape_cast %70 : vector<1x2x32xf32> to vector<2x32xf32>
      %c2_i32_43 = arith.constant 2 : i32
      %72 = arith.muli %c2_i32_43, %13 : i32
      %c1_i32_44 = arith.constant 1 : i32
      %73 = arith.addi %72, %c1_i32_44 : i32
      %74 = arith.index_cast %73 : i32 to index
      %c0_45 = arith.constant 0 : index
      %c0_46 = arith.constant 0 : index
      %75 = vector.load %arg21[%74, %c0_45, %c0_46] : memref<32x2x32xf32, #tpu.memory_space<vmem>>, vector<1x2x32xf32>
      %76 = vector.shape_cast %75 : vector<1x2x32xf32> to vector<2x32xf32>
      %c2_i32_47 = arith.constant 2 : i32
      %77 = arith.muli %c2_i32_47, %13 : i32
      %c1_i32_48 = arith.constant 1 : i32
      %78 = arith.addi %77, %c1_i32_48 : i32
      %79 = arith.index_cast %78 : i32 to index
      %c0_49 = arith.constant 0 : index
      %c0_50 = arith.constant 0 : index
      %80 = vector.load %arg22[%79, %c0_49, %c0_50] : memref<32x2x32xf32, #tpu.memory_space<vmem>>, vector<1x2x32xf32>
      %81 = vector.shape_cast %80 : vector<1x2x32xf32> to vector<2x32xf32>
      %82 = tpu.concatenate %67, %71, %76, %81 in 1 : vector<2x32xf32>, vector<2x32xf32>, vector<2x32xf32>, vector<2x32xf32> -> vector<2x128xf32>
      %83 = tpu.concatenate %82, %arg32 in 1 : vector<2x128xf32>, vector<2x32xf32> -> vector<2x160xf32>
      %c0_51 = arith.constant 0 : index
      %c0_52 = arith.constant 0 : index
      %84 = vector.load %arg7[%c0_51, %c0_52] : memref<160x128xf32, #tpu.memory_space<vmem>>, vector<160x128xf32>
      %cst_53 = arith.constant dense<0.000000e+00> : vector<2x128xf32>
      %85 = tpu.matmul %83, %84, %cst_53 {dimension_numbers = #tpu.dot_dimension_numbers<[1], [0], [0], [1], [0, 0, 1, 1], [], []>} : vector<2x160xf32>, vector<160x128xf32>, vector<2x128xf32> -> vector<2x128xf32>
      %c0_54 = arith.constant 0 : index
      %c0_55 = arith.constant 0 : index
      %86 = vector.load %arg8[%c0_54, %c0_55] : memref<1x128xf32, #tpu.memory_space<vmem>>, vector<1x128xf32>
      %87 = vector.broadcast %86 : vector<1x128xf32> to vector<2x128xf32>
      %88 = arith.addf %85, %87 : vector<2x128xf32>
      %89 = vector.extract_strided_slice %88 {offsets = [0, 0], sizes = [2, 32], strides = [1, 1]} : vector<2x128xf32> to vector<2x32xf32>
      %90 = arith.negf %89 : vector<2x32xf32>
      %91 = math.exp %90 : vector<2x32xf32>
      %cst_56 = arith.constant 1.000000e+00 : f32
      %92 = vector.broadcast %cst_56 : f32 to vector<2x32xf32>
      %93 = arith.addf %92, %91 : vector<2x32xf32>
      %94 = arith.divf %92, %93 : vector<2x32xf32>
      %95 = vector.extract_strided_slice %88 {offsets = [0, 32], sizes = [2, 32], strides = [1, 1]} : vector<2x128xf32> to vector<2x32xf32>
      %96 = arith.negf %95 : vector<2x32xf32>
      %97 = math.exp %96 : vector<2x32xf32>
      %cst_57 = arith.constant 1.000000e+00 : f32
      %98 = vector.broadcast %cst_57 : f32 to vector<2x32xf32>
      %99 = arith.addf %98, %97 : vector<2x32xf32>
      %100 = arith.divf %98, %99 : vector<2x32xf32>
      %101 = vector.extract_strided_slice %88 {offsets = [0, 64], sizes = [2, 32], strides = [1, 1]} : vector<2x128xf32> to vector<2x32xf32>
      %102 = math.tanh %101 : vector<2x32xf32>
      %103 = vector.extract_strided_slice %88 {offsets = [0, 96], sizes = [2, 32], strides = [1, 1]} : vector<2x128xf32> to vector<2x32xf32>
      %104 = arith.negf %103 : vector<2x32xf32>
      %105 = math.exp %104 : vector<2x32xf32>
      %cst_58 = arith.constant 1.000000e+00 : f32
      %106 = vector.broadcast %cst_58 : f32 to vector<2x32xf32>
      %107 = arith.addf %106, %105 : vector<2x32xf32>
      %108 = arith.divf %106, %107 : vector<2x32xf32>
      %109 = arith.mulf %100, %arg33 : vector<2x32xf32>
      %110 = arith.mulf %94, %102 : vector<2x32xf32>
      %111 = arith.addf %109, %110 : vector<2x32xf32>
      %112 = math.tanh %111 : vector<2x32xf32>
      %113 = arith.mulf %108, %112 : vector<2x32xf32>
      %114 = arith.index_cast %arg29 : i32 to index
      %c0_59 = arith.constant 0 : index
      %c0_60 = arith.constant 0 : index
      %115 = vector.load %arg23[%114, %c0_59, %c0_60] : memref<16x2x32xf32, #tpu.memory_space<vmem>>, vector<1x2x32xf32>
      %116 = vector.shape_cast %115 : vector<1x2x32xf32> to vector<2x32xf32>
      %117 = vector.shape_cast %63 : vector<2x32xf32> to vector<1x2x32xf32>
      tpu.vector_store %arg23[%114, %c0_59, %c0_60], %117 {strides = array<i32>} : memref<16x2x32xf32, #tpu.memory_space<vmem>>, vector<1x2x32xf32>,
      %118 = arith.index_cast %13 : i32 to index
      %c0_61 = arith.constant 0 : index
      %c0_62 = arith.constant 0 : index
      %119 = vector.load %arg24[%118, %c0_61, %c0_62] : memref<16x2x32xf32, #tpu.memory_space<vmem>>, vector<1x2x32xf32>
      %120 = vector.shape_cast %119 : vector<1x2x32xf32> to vector<2x32xf32>
      %121 = vector.shape_cast %113 : vector<2x32xf32> to vector<1x2x32xf32>
      tpu.vector_store %arg24[%118, %c0_61, %c0_62], %121 {strides = array<i32>} : memref<16x2x32xf32, #tpu.memory_space<vmem>>, vector<1x2x32xf32>,
      scf.yield %63, %61, %113, %111 : vector<2x32xf32>, vector<2x32xf32>, vector<2x32xf32>, vector<2x32xf32>
    }
    %c16_i32_4 = arith.constant 16 : i32
    %cst_5 = arith.constant 0.000000e+00 : f32
    %6 = vector.broadcast %cst_5 : f32 to vector<2x32xf32>
    %c0_i32_6 = arith.constant 0 : i32
    %c8_i32 = arith.constant 8 : i32
    %7 = arith.addi %c0_i32_6, %c8_i32 : i32
    %c1_i32_7 = arith.constant 1 : i32
    %8:4 = scf.for %arg29 = %c0_i32_6 to %7 step %c1_i32_7 iter_args(%arg30 = %6, %arg31 = %6, %arg32 = %6, %arg33 = %6) -> (vector<2x32xf32>, vector<2x32xf32>, vector<2x32xf32>, vector<2x32xf32>)  : i32 {
      %c7_i32 = arith.constant 7 : i32
      %13 = arith.subi %c7_i32, %arg29 : i32
      %c2_i32 = arith.constant 2 : i32
      %14 = arith.muli %c2_i32, %arg29 : i32
      %15 = arith.index_cast %14 : i32 to index
      %c0 = arith.constant 0 : index
      %c0_17 = arith.constant 0 : index
      %16 = vector.load %arg23[%15, %c0, %c0_17] : memref<16x2x32xf32, #tpu.memory_space<vmem>>, vector<1x2x32xf32>
      %17 = vector.shape_cast %16 : vector<1x2x32xf32> to vector<2x32xf32>
      %c2_i32_18 = arith.constant 2 : i32
      %18 = arith.muli %c2_i32_18, %arg29 : i32
      %19 = arith.index_cast %18 : i32 to index
      %c0_19 = arith.constant 0 : index
      %c0_20 = arith.constant 0 : index
      %20 = vector.load %arg24[%19, %c0_19, %c0_20] : memref<16x2x32xf32, #tpu.memory_space<vmem>>, vector<1x2x32xf32>
      %21 = vector.shape_cast %20 : vector<1x2x32xf32> to vector<2x32xf32>
      %c2_i32_21 = arith.constant 2 : i32
      %22 = arith.muli %c2_i32_21, %arg29 : i32
      %c1_i32_22 = arith.constant 1 : i32
      %23 = arith.addi %22, %c1_i32_22 : i32
      %24 = arith.index_cast %23 : i32 to index
      %c0_23 = arith.constant 0 : index
      %c0_24 = arith.constant 0 : index
      %25 = vector.load %arg23[%24, %c0_23, %c0_24] : memref<16x2x32xf32, #tpu.memory_space<vmem>>, vector<1x2x32xf32>
      %26 = vector.shape_cast %25 : vector<1x2x32xf32> to vector<2x32xf32>
      %c2_i32_25 = arith.constant 2 : i32
      %27 = arith.muli %c2_i32_25, %arg29 : i32
      %c1_i32_26 = arith.constant 1 : i32
      %28 = arith.addi %27, %c1_i32_26 : i32
      %29 = arith.index_cast %28 : i32 to index
      %c0_27 = arith.constant 0 : index
      %c0_28 = arith.constant 0 : index
      %30 = vector.load %arg24[%29, %c0_27, %c0_28] : memref<16x2x32xf32, #tpu.memory_space<vmem>>, vector<1x2x32xf32>
      %31 = vector.shape_cast %30 : vector<1x2x32xf32> to vector<2x32xf32>
      %32 = tpu.concatenate %17, %21, %26, %31 in 1 : vector<2x32xf32>, vector<2x32xf32>, vector<2x32xf32>, vector<2x32xf32> -> vector<2x128xf32>
      %33 = tpu.concatenate %32, %arg30 in 1 : vector<2x128xf32>, vector<2x32xf32> -> vector<2x160xf32>
      %c0_29 = arith.constant 0 : index
      %c0_30 = arith.constant 0 : index
      %34 = vector.load %arg9[%c0_29, %c0_30] : memref<160x128xf32, #tpu.memory_space<vmem>>, vector<160x128xf32>
      %cst_31 = arith.constant dense<0.000000e+00> : vector<2x128xf32>
      %35 = tpu.matmul %33, %34, %cst_31 {dimension_numbers = #tpu.dot_dimension_numbers<[1], [0], [0], [1], [0, 0, 1, 1], [], []>} : vector<2x160xf32>, vector<160x128xf32>, vector<2x128xf32> -> vector<2x128xf32>
      %c0_32 = arith.constant 0 : index
      %c0_33 = arith.constant 0 : index
      %36 = vector.load %arg10[%c0_32, %c0_33] : memref<1x128xf32, #tpu.memory_space<vmem>>, vector<1x128xf32>
      %37 = vector.broadcast %36 : vector<1x128xf32> to vector<2x128xf32>
      %38 = arith.addf %35, %37 : vector<2x128xf32>
      %39 = vector.extract_strided_slice %38 {offsets = [0, 0], sizes = [2, 32], strides = [1, 1]} : vector<2x128xf32> to vector<2x32xf32>
      %40 = arith.negf %39 : vector<2x32xf32>
      %41 = math.exp %40 : vector<2x32xf32>
      %cst_34 = arith.constant 1.000000e+00 : f32
      %42 = vector.broadcast %cst_34 : f32 to vector<2x32xf32>
      %43 = arith.addf %42, %41 : vector<2x32xf32>
      %44 = arith.divf %42, %43 : vector<2x32xf32>
      %45 = vector.extract_strided_slice %38 {offsets = [0, 32], sizes = [2, 32], strides = [1, 1]} : vector<2x128xf32> to vector<2x32xf32>
      %46 = arith.negf %45 : vector<2x32xf32>
      %47 = math.exp %46 : vector<2x32xf32>
      %cst_35 = arith.constant 1.000000e+00 : f32
      %48 = vector.broadcast %cst_35 : f32 to vector<2x32xf32>
      %49 = arith.addf %48, %47 : vector<2x32xf32>
      %50 = arith.divf %48, %49 : vector<2x32xf32>
      %51 = vector.extract_strided_slice %38 {offsets = [0, 64], sizes = [2, 32], strides = [1, 1]} : vector<2x128xf32> to vector<2x32xf32>
      %52 = math.tanh %51 : vector<2x32xf32>
      %53 = vector.extract_strided_slice %38 {offsets = [0, 96], sizes = [2, 32], strides = [1, 1]} : vector<2x128xf32> to vector<2x32xf32>
      %54 = arith.negf %53 : vector<2x32xf32>
      %55 = math.exp %54 : vector<2x32xf32>
      %cst_36 = arith.constant 1.000000e+00 : f32
      %56 = vector.broadcast %cst_36 : f32 to vector<2x32xf32>
      %57 = arith.addf %56, %55 : vector<2x32xf32>
      %58 = arith.divf %56, %57 : vector<2x32xf32>
      %59 = arith.mulf %50, %arg31 : vector<2x32xf32>
      %60 = arith.mulf %44, %52 : vector<2x32xf32>
      %61 = arith.addf %59, %60 : vector<2x32xf32>
      %62 = math.tanh %61 : vector<2x32xf32>
      %63 = arith.mulf %58, %62 : vector<2x32xf32>
      %c2_i32_37 = arith.constant 2 : i32
      %64 = arith.muli %c2_i32_37, %13 : i32
      %65 = arith.index_cast %64 : i32 to index
      %c0_38 = arith.constant 0 : index
      %c0_39 = arith.constant 0 : index
      %66 = vector.load %arg23[%65, %c0_38, %c0_39] : memref<16x2x32xf32, #tpu.memory_space<vmem>>, vector<1x2x32xf32>
      %67 = vector.shape_cast %66 : vector<1x2x32xf32> to vector<2x32xf32>
      %c2_i32_40 = arith.constant 2 : i32
      %68 = arith.muli %c2_i32_40, %13 : i32
      %69 = arith.index_cast %68 : i32 to index
      %c0_41 = arith.constant 0 : index
      %c0_42 = arith.constant 0 : index
      %70 = vector.load %arg24[%69, %c0_41, %c0_42] : memref<16x2x32xf32, #tpu.memory_space<vmem>>, vector<1x2x32xf32>
      %71 = vector.shape_cast %70 : vector<1x2x32xf32> to vector<2x32xf32>
      %c2_i32_43 = arith.constant 2 : i32
      %72 = arith.muli %c2_i32_43, %13 : i32
      %c1_i32_44 = arith.constant 1 : i32
      %73 = arith.addi %72, %c1_i32_44 : i32
      %74 = arith.index_cast %73 : i32 to index
      %c0_45 = arith.constant 0 : index
      %c0_46 = arith.constant 0 : index
      %75 = vector.load %arg23[%74, %c0_45, %c0_46] : memref<16x2x32xf32, #tpu.memory_space<vmem>>, vector<1x2x32xf32>
      %76 = vector.shape_cast %75 : vector<1x2x32xf32> to vector<2x32xf32>
      %c2_i32_47 = arith.constant 2 : i32
      %77 = arith.muli %c2_i32_47, %13 : i32
      %c1_i32_48 = arith.constant 1 : i32
      %78 = arith.addi %77, %c1_i32_48 : i32
      %79 = arith.index_cast %78 : i32 to index
      %c0_49 = arith.constant 0 : index
      %c0_50 = arith.constant 0 : index
      %80 = vector.load %arg24[%79, %c0_49, %c0_50] : memref<16x2x32xf32, #tpu.memory_space<vmem>>, vector<1x2x32xf32>
      %81 = vector.shape_cast %80 : vector<1x2x32xf32> to vector<2x32xf32>
      %82 = tpu.concatenate %67, %71, %76, %81 in 1 : vector<2x32xf32>, vector<2x32xf32>, vector<2x32xf32>, vector<2x32xf32> -> vector<2x128xf32>
      %83 = tpu.concatenate %82, %arg32 in 1 : vector<2x128xf32>, vector<2x32xf32> -> vector<2x160xf32>
      %c0_51 = arith.constant 0 : index
      %c0_52 = arith.constant 0 : index
      %84 = vector.load %arg11[%c0_51, %c0_52] : memref<160x128xf32, #tpu.memory_space<vmem>>, vector<160x128xf32>
      %cst_53 = arith.constant dense<0.000000e+00> : vector<2x128xf32>
      %85 = tpu.matmul %83, %84, %cst_53 {dimension_numbers = #tpu.dot_dimension_numbers<[1], [0], [0], [1], [0, 0, 1, 1], [], []>} : vector<2x160xf32>, vector<160x128xf32>, vector<2x128xf32> -> vector<2x128xf32>
      %c0_54 = arith.constant 0 : index
      %c0_55 = arith.constant 0 : index
      %86 = vector.load %arg12[%c0_54, %c0_55] : memref<1x128xf32, #tpu.memory_space<vmem>>, vector<1x128xf32>
      %87 = vector.broadcast %86 : vector<1x128xf32> to vector<2x128xf32>
      %88 = arith.addf %85, %87 : vector<2x128xf32>
      %89 = vector.extract_strided_slice %88 {offsets = [0, 0], sizes = [2, 32], strides = [1, 1]} : vector<2x128xf32> to vector<2x32xf32>
      %90 = arith.negf %89 : vector<2x32xf32>
      %91 = math.exp %90 : vector<2x32xf32>
      %cst_56 = arith.constant 1.000000e+00 : f32
      %92 = vector.broadcast %cst_56 : f32 to vector<2x32xf32>
      %93 = arith.addf %92, %91 : vector<2x32xf32>
      %94 = arith.divf %92, %93 : vector<2x32xf32>
      %95 = vector.extract_strided_slice %88 {offsets = [0, 32], sizes = [2, 32], strides = [1, 1]} : vector<2x128xf32> to vector<2x32xf32>
      %96 = arith.negf %95 : vector<2x32xf32>
      %97 = math.exp %96 : vector<2x32xf32>
      %cst_57 = arith.constant 1.000000e+00 : f32
      %98 = vector.broadcast %cst_57 : f32 to vector<2x32xf32>
      %99 = arith.addf %98, %97 : vector<2x32xf32>
      %100 = arith.divf %98, %99 : vector<2x32xf32>
      %101 = vector.extract_strided_slice %88 {offsets = [0, 64], sizes = [2, 32], strides = [1, 1]} : vector<2x128xf32> to vector<2x32xf32>
      %102 = math.tanh %101 : vector<2x32xf32>
      %103 = vector.extract_strided_slice %88 {offsets = [0, 96], sizes = [2, 32], strides = [1, 1]} : vector<2x128xf32> to vector<2x32xf32>
      %104 = arith.negf %103 : vector<2x32xf32>
      %105 = math.exp %104 : vector<2x32xf32>
      %cst_58 = arith.constant 1.000000e+00 : f32
      %106 = vector.broadcast %cst_58 : f32 to vector<2x32xf32>
      %107 = arith.addf %106, %105 : vector<2x32xf32>
      %108 = arith.divf %106, %107 : vector<2x32xf32>
      %109 = arith.mulf %100, %arg33 : vector<2x32xf32>
      %110 = arith.mulf %94, %102 : vector<2x32xf32>
      %111 = arith.addf %109, %110 : vector<2x32xf32>
      %112 = math.tanh %111 : vector<2x32xf32>
      %113 = arith.mulf %108, %112 : vector<2x32xf32>
      %114 = arith.index_cast %arg29 : i32 to index
      %c0_59 = arith.constant 0 : index
      %c0_60 = arith.constant 0 : index
      %115 = vector.load %arg25[%114, %c0_59, %c0_60] : memref<8x2x32xf32, #tpu.memory_space<vmem>>, vector<1x2x32xf32>
      %116 = vector.shape_cast %115 : vector<1x2x32xf32> to vector<2x32xf32>
      %117 = vector.shape_cast %63 : vector<2x32xf32> to vector<1x2x32xf32>
      tpu.vector_store %arg25[%114, %c0_59, %c0_60], %117 {strides = array<i32>} : memref<8x2x32xf32, #tpu.memory_space<vmem>>, vector<1x2x32xf32>,
      %118 = arith.index_cast %13 : i32 to index
      %c0_61 = arith.constant 0 : index
      %c0_62 = arith.constant 0 : index
      %119 = vector.load %arg26[%118, %c0_61, %c0_62] : memref<8x2x32xf32, #tpu.memory_space<vmem>>, vector<1x2x32xf32>
      %120 = vector.shape_cast %119 : vector<1x2x32xf32> to vector<2x32xf32>
      %121 = vector.shape_cast %113 : vector<2x32xf32> to vector<1x2x32xf32>
      tpu.vector_store %arg26[%118, %c0_61, %c0_62], %121 {strides = array<i32>} : memref<8x2x32xf32, #tpu.memory_space<vmem>>, vector<1x2x32xf32>,
      scf.yield %63, %61, %113, %111 : vector<2x32xf32>, vector<2x32xf32>, vector<2x32xf32>, vector<2x32xf32>
    }
    %c8_i32_8 = arith.constant 8 : i32
    %cst_9 = arith.constant 0.000000e+00 : f32
    %9 = vector.broadcast %cst_9 : f32 to vector<2x32xf32>
    %c0_i32_10 = arith.constant 0 : i32
    %c4_i32 = arith.constant 4 : i32
    %10 = arith.addi %c0_i32_10, %c4_i32 : i32
    %c1_i32_11 = arith.constant 1 : i32
    %11:4 = scf.for %arg29 = %c0_i32_10 to %10 step %c1_i32_11 iter_args(%arg30 = %9, %arg31 = %9, %arg32 = %9, %arg33 = %9) -> (vector<2x32xf32>, vector<2x32xf32>, vector<2x32xf32>, vector<2x32xf32>)  : i32 {
      %c3_i32 = arith.constant 3 : i32
      %13 = arith.subi %c3_i32, %arg29 : i32
      %c2_i32 = arith.constant 2 : i32
      %14 = arith.muli %c2_i32, %arg29 : i32
      %15 = arith.index_cast %14 : i32 to index
      %c0 = arith.constant 0 : index
      %c0_17 = arith.constant 0 : index
      %16 = vector.load %arg25[%15, %c0, %c0_17] : memref<8x2x32xf32, #tpu.memory_space<vmem>>, vector<1x2x32xf32>
      %17 = vector.shape_cast %16 : vector<1x2x32xf32> to vector<2x32xf32>
      %c2_i32_18 = arith.constant 2 : i32
      %18 = arith.muli %c2_i32_18, %arg29 : i32
      %19 = arith.index_cast %18 : i32 to index
      %c0_19 = arith.constant 0 : index
      %c0_20 = arith.constant 0 : index
      %20 = vector.load %arg26[%19, %c0_19, %c0_20] : memref<8x2x32xf32, #tpu.memory_space<vmem>>, vector<1x2x32xf32>
      %21 = vector.shape_cast %20 : vector<1x2x32xf32> to vector<2x32xf32>
      %c2_i32_21 = arith.constant 2 : i32
      %22 = arith.muli %c2_i32_21, %arg29 : i32
      %c1_i32_22 = arith.constant 1 : i32
      %23 = arith.addi %22, %c1_i32_22 : i32
      %24 = arith.index_cast %23 : i32 to index
      %c0_23 = arith.constant 0 : index
      %c0_24 = arith.constant 0 : index
      %25 = vector.load %arg25[%24, %c0_23, %c0_24] : memref<8x2x32xf32, #tpu.memory_space<vmem>>, vector<1x2x32xf32>
      %26 = vector.shape_cast %25 : vector<1x2x32xf32> to vector<2x32xf32>
      %c2_i32_25 = arith.constant 2 : i32
      %27 = arith.muli %c2_i32_25, %arg29 : i32
      %c1_i32_26 = arith.constant 1 : i32
      %28 = arith.addi %27, %c1_i32_26 : i32
      %29 = arith.index_cast %28 : i32 to index
      %c0_27 = arith.constant 0 : index
      %c0_28 = arith.constant 0 : index
      %30 = vector.load %arg26[%29, %c0_27, %c0_28] : memref<8x2x32xf32, #tpu.memory_space<vmem>>, vector<1x2x32xf32>
      %31 = vector.shape_cast %30 : vector<1x2x32xf32> to vector<2x32xf32>
      %32 = tpu.concatenate %17, %21, %26, %31 in 1 : vector<2x32xf32>, vector<2x32xf32>, vector<2x32xf32>, vector<2x32xf32> -> vector<2x128xf32>
      %33 = tpu.concatenate %32, %arg30 in 1 : vector<2x128xf32>, vector<2x32xf32> -> vector<2x160xf32>
      %c0_29 = arith.constant 0 : index
      %c0_30 = arith.constant 0 : index
      %34 = vector.load %arg13[%c0_29, %c0_30] : memref<160x128xf32, #tpu.memory_space<vmem>>, vector<160x128xf32>
      %cst_31 = arith.constant dense<0.000000e+00> : vector<2x128xf32>
      %35 = tpu.matmul %33, %34, %cst_31 {dimension_numbers = #tpu.dot_dimension_numbers<[1], [0], [0], [1], [0, 0, 1, 1], [], []>} : vector<2x160xf32>, vector<160x128xf32>, vector<2x128xf32> -> vector<2x128xf32>
      %c0_32 = arith.constant 0 : index
      %c0_33 = arith.constant 0 : index
      %36 = vector.load %arg14[%c0_32, %c0_33] : memref<1x128xf32, #tpu.memory_space<vmem>>, vector<1x128xf32>
      %37 = vector.broadcast %36 : vector<1x128xf32> to vector<2x128xf32>
      %38 = arith.addf %35, %37 : vector<2x128xf32>
      %39 = vector.extract_strided_slice %38 {offsets = [0, 0], sizes = [2, 32], strides = [1, 1]} : vector<2x128xf32> to vector<2x32xf32>
      %40 = arith.negf %39 : vector<2x32xf32>
      %41 = math.exp %40 : vector<2x32xf32>
      %cst_34 = arith.constant 1.000000e+00 : f32
      %42 = vector.broadcast %cst_34 : f32 to vector<2x32xf32>
      %43 = arith.addf %42, %41 : vector<2x32xf32>
      %44 = arith.divf %42, %43 : vector<2x32xf32>
      %45 = vector.extract_strided_slice %38 {offsets = [0, 32], sizes = [2, 32], strides = [1, 1]} : vector<2x128xf32> to vector<2x32xf32>
      %46 = arith.negf %45 : vector<2x32xf32>
      %47 = math.exp %46 : vector<2x32xf32>
      %cst_35 = arith.constant 1.000000e+00 : f32
      %48 = vector.broadcast %cst_35 : f32 to vector<2x32xf32>
      %49 = arith.addf %48, %47 : vector<2x32xf32>
      %50 = arith.divf %48, %49 : vector<2x32xf32>
      %51 = vector.extract_strided_slice %38 {offsets = [0, 64], sizes = [2, 32], strides = [1, 1]} : vector<2x128xf32> to vector<2x32xf32>
      %52 = math.tanh %51 : vector<2x32xf32>
      %53 = vector.extract_strided_slice %38 {offsets = [0, 96], sizes = [2, 32], strides = [1, 1]} : vector<2x128xf32> to vector<2x32xf32>
      %54 = arith.negf %53 : vector<2x32xf32>
      %55 = math.exp %54 : vector<2x32xf32>
      %cst_36 = arith.constant 1.000000e+00 : f32
      %56 = vector.broadcast %cst_36 : f32 to vector<2x32xf32>
      %57 = arith.addf %56, %55 : vector<2x32xf32>
      %58 = arith.divf %56, %57 : vector<2x32xf32>
      %59 = arith.mulf %50, %arg31 : vector<2x32xf32>
      %60 = arith.mulf %44, %52 : vector<2x32xf32>
      %61 = arith.addf %59, %60 : vector<2x32xf32>
      %62 = math.tanh %61 : vector<2x32xf32>
      %63 = arith.mulf %58, %62 : vector<2x32xf32>
      %c2_i32_37 = arith.constant 2 : i32
      %64 = arith.muli %c2_i32_37, %13 : i32
      %65 = arith.index_cast %64 : i32 to index
      %c0_38 = arith.constant 0 : index
      %c0_39 = arith.constant 0 : index
      %66 = vector.load %arg25[%65, %c0_38, %c0_39] : memref<8x2x32xf32, #tpu.memory_space<vmem>>, vector<1x2x32xf32>
      %67 = vector.shape_cast %66 : vector<1x2x32xf32> to vector<2x32xf32>
      %c2_i32_40 = arith.constant 2 : i32
      %68 = arith.muli %c2_i32_40, %13 : i32
      %69 = arith.index_cast %68 : i32 to index
      %c0_41 = arith.constant 0 : index
      %c0_42 = arith.constant 0 : index
      %70 = vector.load %arg26[%69, %c0_41, %c0_42] : memref<8x2x32xf32, #tpu.memory_space<vmem>>, vector<1x2x32xf32>
      %71 = vector.shape_cast %70 : vector<1x2x32xf32> to vector<2x32xf32>
      %c2_i32_43 = arith.constant 2 : i32
      %72 = arith.muli %c2_i32_43, %13 : i32
      %c1_i32_44 = arith.constant 1 : i32
      %73 = arith.addi %72, %c1_i32_44 : i32
      %74 = arith.index_cast %73 : i32 to index
      %c0_45 = arith.constant 0 : index
      %c0_46 = arith.constant 0 : index
      %75 = vector.load %arg25[%74, %c0_45, %c0_46] : memref<8x2x32xf32, #tpu.memory_space<vmem>>, vector<1x2x32xf32>
      %76 = vector.shape_cast %75 : vector<1x2x32xf32> to vector<2x32xf32>
      %c2_i32_47 = arith.constant 2 : i32
      %77 = arith.muli %c2_i32_47, %13 : i32
      %c1_i32_48 = arith.constant 1 : i32
      %78 = arith.addi %77, %c1_i32_48 : i32
      %79 = arith.index_cast %78 : i32 to index
      %c0_49 = arith.constant 0 : index
      %c0_50 = arith.constant 0 : index
      %80 = vector.load %arg26[%79, %c0_49, %c0_50] : memref<8x2x32xf32, #tpu.memory_space<vmem>>, vector<1x2x32xf32>
      %81 = vector.shape_cast %80 : vector<1x2x32xf32> to vector<2x32xf32>
      %82 = tpu.concatenate %67, %71, %76, %81 in 1 : vector<2x32xf32>, vector<2x32xf32>, vector<2x32xf32>, vector<2x32xf32> -> vector<2x128xf32>
      %83 = tpu.concatenate %82, %arg32 in 1 : vector<2x128xf32>, vector<2x32xf32> -> vector<2x160xf32>
      %c0_51 = arith.constant 0 : index
      %c0_52 = arith.constant 0 : index
      %84 = vector.load %arg15[%c0_51, %c0_52] : memref<160x128xf32, #tpu.memory_space<vmem>>, vector<160x128xf32>
      %cst_53 = arith.constant dense<0.000000e+00> : vector<2x128xf32>
      %85 = tpu.matmul %83, %84, %cst_53 {dimension_numbers = #tpu.dot_dimension_numbers<[1], [0], [0], [1], [0, 0, 1, 1], [], []>} : vector<2x160xf32>, vector<160x128xf32>, vector<2x128xf32> -> vector<2x128xf32>
      %c0_54 = arith.constant 0 : index
      %c0_55 = arith.constant 0 : index
      %86 = vector.load %arg16[%c0_54, %c0_55] : memref<1x128xf32, #tpu.memory_space<vmem>>, vector<1x128xf32>
      %87 = vector.broadcast %86 : vector<1x128xf32> to vector<2x128xf32>
      %88 = arith.addf %85, %87 : vector<2x128xf32>
      %89 = vector.extract_strided_slice %88 {offsets = [0, 0], sizes = [2, 32], strides = [1, 1]} : vector<2x128xf32> to vector<2x32xf32>
      %90 = arith.negf %89 : vector<2x32xf32>
      %91 = math.exp %90 : vector<2x32xf32>
      %cst_56 = arith.constant 1.000000e+00 : f32
      %92 = vector.broadcast %cst_56 : f32 to vector<2x32xf32>
      %93 = arith.addf %92, %91 : vector<2x32xf32>
      %94 = arith.divf %92, %93 : vector<2x32xf32>
      %95 = vector.extract_strided_slice %88 {offsets = [0, 32], sizes = [2, 32], strides = [1, 1]} : vector<2x128xf32> to vector<2x32xf32>
      %96 = arith.negf %95 : vector<2x32xf32>
      %97 = math.exp %96 : vector<2x32xf32>
      %cst_57 = arith.constant 1.000000e+00 : f32
      %98 = vector.broadcast %cst_57 : f32 to vector<2x32xf32>
      %99 = arith.addf %98, %97 : vector<2x32xf32>
      %100 = arith.divf %98, %99 : vector<2x32xf32>
      %101 = vector.extract_strided_slice %88 {offsets = [0, 64], sizes = [2, 32], strides = [1, 1]} : vector<2x128xf32> to vector<2x32xf32>
      %102 = math.tanh %101 : vector<2x32xf32>
      %103 = vector.extract_strided_slice %88 {offsets = [0, 96], sizes = [2, 32], strides = [1, 1]} : vector<2x128xf32> to vector<2x32xf32>
      %104 = arith.negf %103 : vector<2x32xf32>
      %105 = math.exp %104 : vector<2x32xf32>
      %cst_58 = arith.constant 1.000000e+00 : f32
      %106 = vector.broadcast %cst_58 : f32 to vector<2x32xf32>
      %107 = arith.addf %106, %105 : vector<2x32xf32>
      %108 = arith.divf %106, %107 : vector<2x32xf32>
      %109 = arith.mulf %100, %arg33 : vector<2x32xf32>
      %110 = arith.mulf %94, %102 : vector<2x32xf32>
      %111 = arith.addf %109, %110 : vector<2x32xf32>
      %112 = math.tanh %111 : vector<2x32xf32>
      %113 = arith.mulf %108, %112 : vector<2x32xf32>
      %114 = arith.index_cast %arg29 : i32 to index
      %c0_59 = arith.constant 0 : index
      %c0_60 = arith.constant 0 : index
      %115 = vector.load %arg27[%114, %c0_59, %c0_60] : memref<4x2x32xf32, #tpu.memory_space<vmem>>, vector<1x2x32xf32>
      %116 = vector.shape_cast %115 : vector<1x2x32xf32> to vector<2x32xf32>
      %117 = vector.shape_cast %63 : vector<2x32xf32> to vector<1x2x32xf32>
      tpu.vector_store %arg27[%114, %c0_59, %c0_60], %117 {strides = array<i32>} : memref<4x2x32xf32, #tpu.memory_space<vmem>>, vector<1x2x32xf32>,
      %118 = arith.index_cast %13 : i32 to index
      %c0_61 = arith.constant 0 : index
      %c0_62 = arith.constant 0 : index
      %119 = vector.load %arg28[%118, %c0_61, %c0_62] : memref<4x2x32xf32, #tpu.memory_space<vmem>>, vector<1x2x32xf32>
      %120 = vector.shape_cast %119 : vector<1x2x32xf32> to vector<2x32xf32>
      %121 = vector.shape_cast %113 : vector<2x32xf32> to vector<1x2x32xf32>
      tpu.vector_store %arg28[%118, %c0_61, %c0_62], %121 {strides = array<i32>} : memref<4x2x32xf32, #tpu.memory_space<vmem>>, vector<1x2x32xf32>,
      scf.yield %63, %61, %113, %111 : vector<2x32xf32>, vector<2x32xf32>, vector<2x32xf32>, vector<2x32xf32>
    }
    %c4_i32_12 = arith.constant 4 : i32
    %c0_i32_13 = arith.constant 0 : i32
    %c4_i32_14 = arith.constant 4 : i32
    %12 = arith.addi %c0_i32_13, %c4_i32_14 : i32
    %c1_i32_15 = arith.constant 1 : i32
    scf.for %arg29 = %c0_i32_13 to %12 step %c1_i32_15  : i32 {
      %13 = arith.index_cast %arg29 : i32 to index
      %c0 = arith.constant 0 : index
      %c0_17 = arith.constant 0 : index
      %14 = vector.load %arg27[%13, %c0, %c0_17] : memref<4x2x32xf32, #tpu.memory_space<vmem>>, vector<1x2x32xf32>
      %15 = vector.shape_cast %14 : vector<1x2x32xf32> to vector<2x32xf32>
      %16 = arith.index_cast %arg29 : i32 to index
      %c0_18 = arith.constant 0 : index
      %c0_19 = arith.constant 0 : index
      %17 = vector.load %arg28[%16, %c0_18, %c0_19] : memref<4x2x32xf32, #tpu.memory_space<vmem>>, vector<1x2x32xf32>
      %18 = vector.shape_cast %17 : vector<1x2x32xf32> to vector<2x32xf32>
      %19 = tpu.concatenate %15, %18 in 1 : vector<2x32xf32>, vector<2x32xf32> -> vector<2x64xf32>
      %c0_20 = arith.constant 0 : index
      %c0_21 = arith.constant 0 : index
      %20 = vector.load %arg17[%c0_20, %c0_21] : memref<64x64xf32, #tpu.memory_space<vmem>>, vector<64x64xf32>
      %cst_22 = arith.constant dense<0.000000e+00> : vector<2x64xf32>
      %21 = tpu.matmul %19, %20, %cst_22 {dimension_numbers = #tpu.dot_dimension_numbers<[1], [0], [0], [1], [0, 0, 1, 1], [], []>} : vector<2x64xf32>, vector<64x64xf32>, vector<2x64xf32> -> vector<2x64xf32>
      %c0_23 = arith.constant 0 : index
      %c0_24 = arith.constant 0 : index
      %22 = vector.load %arg18[%c0_23, %c0_24] : memref<1x64xf32, #tpu.memory_space<vmem>>, vector<1x64xf32>
      %23 = vector.broadcast %22 : vector<1x64xf32> to vector<2x64xf32>
      %24 = arith.addf %21, %23 : vector<2x64xf32>
      %25 = vector.extract_strided_slice %24 {offsets = [0, 0], sizes = [2, 32], strides = [1, 1]} : vector<2x64xf32> to vector<2x32xf32>
      %26 = arith.index_cast %arg29 : i32 to index
      %c0_25 = arith.constant 0 : index
      %c0_26 = arith.constant 0 : index
      %27 = vector.load %arg19[%26, %c0_25, %c0_26] : memref<4x2x32xf32, #tpu.memory_space<vmem>>, vector<1x2x32xf32>
      %28 = vector.shape_cast %27 : vector<1x2x32xf32> to vector<2x32xf32>
      %29 = vector.shape_cast %25 : vector<2x32xf32> to vector<1x2x32xf32>
      tpu.vector_store %arg19[%26, %c0_25, %c0_26], %29 {strides = array<i32>} : memref<4x2x32xf32, #tpu.memory_space<vmem>>, vector<1x2x32xf32>,
      %30 = vector.extract_strided_slice %24 {offsets = [0, 32], sizes = [2, 32], strides = [1, 1]} : vector<2x64xf32> to vector<2x32xf32>
      %31 = arith.index_cast %arg29 : i32 to index
      %c0_27 = arith.constant 0 : index
      %c0_28 = arith.constant 0 : index
      %32 = vector.load %arg20[%31, %c0_27, %c0_28] : memref<4x2x32xf32, #tpu.memory_space<vmem>>, vector<1x2x32xf32>
      %33 = vector.shape_cast %32 : vector<1x2x32xf32> to vector<2x32xf32>
      %34 = vector.shape_cast %30 : vector<2x32xf32> to vector<1x2x32xf32>
      tpu.vector_store %arg20[%31, %c0_27, %c0_28], %34 {strides = array<i32>} : memref<4x2x32xf32, #tpu.memory_space<vmem>>, vector<1x2x32xf32>,
    }
    %c4_i32_16 = arith.constant 4 : i32
    return
  }
}

</mosaic_0001>

<bundles_post_ra>
// kernel: tpu_custom_call.1
= control target key start
LH: loop header
LB: loop body
LE: loop exit
PB: predicated region body
PF: predicated region fallthrough
CT: control target
= control target key end

     0   :  { %s3535_s0 = inlined_call_operand.vmem [shape: f32[32,2,8], index: 0, kind: input, shape index: {}]   ;;  %s3536_s1 = inlined_call_operand.vmem [shape: f32[40,128], index: 1, kind: input, shape index: {}]   ;;  %s3537_s2 = inlined_call_operand.vmem [shape: f32[1,128], index: 2, kind: input, shape index: {}]   ;;  %s3538_s3 = inlined_call_operand.hbm [shape: f32[40,128], index: 3, kind: input, shape index: {}]   ;;  %s3539_s4 = inlined_call_operand.vmem [shape: f32[1,128], index: 4, kind: input, shape index: {}]   ;;  %s3540_s5 = inlined_call_operand.hbm [shape: f32[160,128], index: 5, kind: input, shape index: {}]   ;;  %s3541_s6 = inlined_call_operand.vmem [shape: f32[1,128], index: 6, kind: input, shape index: {}]   ;;  %s3542_s7 = inlined_call_operand.hbm [shape: f32[160,128], index: 7, kind: input, shape index: {}]   ;;  %s3543_s8 = inlined_call_operand.vmem [shape: f32[1,128], index: 8, kind: input, shape index: {}]   ;;  %s3544_s9 = inlined_call_operand.hbm [shape: f32[160,128], index: 9, kind: input, shape index: {}]   ;;  %s3545_s10 = inlined_call_operand.vmem [shape: f32[1,128], index: 10, kind: input, shape index: {}]   ;;  %s3546_s11 = inlined_call_operand.hbm [shape: f32[160,128], index: 11, kind: input, shape index: {}]   ;;  %s3547_s12 = inlined_call_operand.vmem [shape: f32[1,128], index: 12, kind: input, shape index: {}]   ;;  %s3548_s13 = inlined_call_operand.hbm [shape: f32[160,128], index: 13, kind: input, shape index: {}]   ;;  %s3549_s14 = inlined_call_operand.vmem [shape: f32[1,128], index: 14, kind: input, shape index: {}]   ;;  %s3550_s15 = inlined_call_operand.hbm [shape: f32[160,128], index: 15, kind: input, shape index: {}]   ;;  %s3551_s16 = inlined_call_operand.vmem [shape: f32[1,128], index: 16, kind: input, shape index: {}]   ;;  %s3552_s17 = inlined_call_operand.vmem [shape: f32[64,64], index: 17, kind: input, shape index: {}]   ;;  %s3553_s18 = inlined_call_operand.vmem [shape: f32[1,64], index: 18, kind: input, shape index: {}]   ;;  %s3554_s19 = inlined_call_operand.hbm [shape: f32[4,2,32], index: 19, kind: output, shape index: {0}]   ;;  %s3555_s20 = inlined_call_operand.hbm [shape: f32[4,2,32], index: 20, kind: output, shape index: {1}]  }
   0x1   :  { %3559 = sst [smem:[#allocation31_spill]] %s3535_s0 }
   0x2   :  { %3560 = sst [smem:[#allocation32_spill]] %s3536_s1 }
   0x3   :  { %3561 = sst [smem:[#allocation33_spill]] %s3537_s2 }
   0x4   :  { %3562 = sst [smem:[#allocation34_spill]] %s3538_s3 }
   0x5   :  { %3563 = sst [smem:[#allocation35_spill]] %s3539_s4 }
   0x6   :  { %26 = vsyncpa [#allocation11], 0 }
   0x7   :  { %27 = vsyncpa [#allocation14], 0 }
   0x8   :  { %28 = vsyncpa [#allocation17], 0 }
   0x9   :  { %29 = vsyncpa [#allocation20], 0 }
   0xa   :  { %30 = vsyncpa [#allocation12], 0 }
   0xb   :  { %31 = vsyncpa [#allocation24], 0  ;;  %s2800_s1 = smov [#allocation13]   ;;  %s2801_s23 = smov [#allocation16]  }
   0xc   :  { %s57_s22 = sshll.u32 %s2800_s1, 4  ;;  %s85_s24 = sshll.u32 %s2801_s23, 4  ;;  %s58_s22 = int_to_ptr.vmem [resolvable:$true] %s57_s22  ;;  %s2941_s24 = int_to_ptr.vmem [resolvable:$true] %s85_s24 }
   0xd   :  { %s2422_s3 = scalar_lea.hbm %s3540_s5, 2560 }
   0xe   :  { %p2423_p0 = scmp.ne.s32.totalorder %s3540_s5, %s2422_s3  ;;  %p2426_p1 = scmp.lt.u32.totalorder %s2422_s3, %s3540_s5 }
  0x10   :  { %p2428_p2 = pnand %p2426_p1, %p2423_p0 }
  0x12   :  { %2431 = shalt.err (!%p2428_p2)
}
  0x13   :  { %s2432_s29 = scalar_lea.vmem %s58_s22, 2560  ;;  %p2437_p4 = scmp.lt.s32.totalorder %s58_s22, %s58_s22 }
  0x14   :  { %p2433_p3 = scmp.ne.s32.totalorder %s58_s22, %s2432_s29  ;;  %p2438_p5 = scmp.lt.s32.totalorder %s2432_s29, %s2432_s29 }
  0x16   :  { %p2439_p6 = por %p2438_p5, %p2437_p4 }
  0x18   :  { %p2440_p7 = pnand %p2439_p6, %p2433_p3 }
  0x1a   :  { %2443 = shalt.err (!%p2440_p7)
}
  0x1b   :  { %s2802_s30 = smov 128   ;;  %s2803_s0 = smov 8  }
  0x1c   :  { %63 = dma.hbm_to_vmem [thread:$0]  %s3540_s5, 2560, %s58_s22, [#allocation14], %s2802_s30, %s2802_s30, %s2803_s0  }
  0x1d   :  { %s2444_s25 = scalar_lea.hbm %s3544_s9, 2560 }
  0x1e   :  { %p2445_p8 = scmp.ne.s32.totalorder %s3544_s9, %s2444_s25  ;;  %p2448_p9 = scmp.lt.u32.totalorder %s2444_s25, %s3544_s9 }
  0x20   :  { %p2450_p10 = pnand %p2448_p9, %p2445_p8 }
  0x22   :  { %2453 = shalt.err (!%p2450_p10)
}
  0x23   :  { %s2454_s4 = scalar_lea.vmem %s2941_s24, 2560  ;;  %p2459_p12 = scmp.lt.s32.totalorder %s2941_s24, %s2941_s24 }
  0x24   :  { %p2455_p11 = scmp.ne.s32.totalorder %s2941_s24, %s2454_s4  ;;  %p2460_p13 = scmp.lt.s32.totalorder %s2454_s4, %s2454_s4 }
  0x26   :  { %p2461_p0 = por %p2460_p13, %p2459_p12 }
  0x28   :  { %p2462_p1 = pnand %p2461_p0, %p2455_p11 }
  0x2a   :  { %2465 = shalt.err (!%p2462_p1)
}
  0x2b   :  { %91 = dma.hbm_to_vmem [thread:$0]  %s3544_s9, 2560, %s2941_s24, [#allocation17], %s2802_s30, %s2802_s30, %s2803_s0  }
  0x2c   :  { %s2804_s29 = smov [#allocation19]   ;;  %s2805_s1 = smov [#allocation10]  }
  0x2d   :  { %s113_s21 = sshll.u32 %s2804_s29, 4  ;;  %s43_s23 = sshll.u32 %s2805_s1, 4  ;;  %s114_s21 = int_to_ptr.vmem [resolvable:$true] %s113_s21  ;;  %s2978_s23 = int_to_ptr.vmem [resolvable:$true] %s43_s23 }
  0x2e   :  { %s2466_s3 = scalar_lea.hbm %s3548_s13, 2560 }
  0x2f   :  { %p2467_p2 = scmp.ne.s32.totalorder %s3548_s13, %s2466_s3  ;;  %p2470_p3 = scmp.lt.u32.totalorder %s2466_s3, %s3548_s13 }
  0x31   :  { %p2472_p4 = pnand %p2470_p3, %p2467_p2 }
  0x33   :  { %2475 = shalt.err (!%p2472_p4)
}
  0x34   :  { %s2476_s9 = scalar_lea.vmem %s114_s21, 2560  ;;  %p2481_p6 = scmp.lt.s32.totalorder %s114_s21, %s114_s21 }
  0x35   :  { %p2477_p5 = scmp.ne.s32.totalorder %s114_s21, %s2476_s9  ;;  %p2482_p7 = scmp.lt.s32.totalorder %s2476_s9, %s2476_s9 }
  0x37   :  { %p2483_p8 = por %p2482_p7, %p2481_p6 }
  0x39   :  { %p2484_p9 = pnand %p2483_p8, %p2477_p5 }
  0x3b   :  { %2487 = shalt.err (!%p2484_p9)
}
  0x3c   :  { %119 = dma.hbm_to_vmem [thread:$0]  %s3548_s13, 2560, %s114_s21, [#allocation20], %s2802_s30, %s2802_s30, %s2803_s0  }
  0x3d   :  { %s3564_s1 = sld [smem:[#allocation34_spill]] }
  0x43   :  { %s2488_s2 = scalar_lea.hbm %s3564_s1, 640 }
  0x44   :  { %p2489_p10 = scmp.ne.s32.totalorder %s3564_s1, %s2488_s2  ;;  %p2492_p11 = scmp.lt.u32.totalorder %s2488_s2, %s3564_s1 }
  0x46   :  { %p2494_p12 = pnand %p2492_p11, %p2489_p10 }
  0x48   :  { %2497 = shalt.err (!%p2494_p12)
}
  0x49   :  { %s2498_s28 = scalar_lea.vmem %s2978_s23, 640  ;;  %p2503_p0 = scmp.lt.s32.totalorder %s2978_s23, %s2978_s23 }
  0x4a   :  { %p2499_p13 = scmp.ne.s32.totalorder %s2978_s23, %s2498_s28  ;;  %p2504_p1 = scmp.lt.s32.totalorder %s2498_s28, %s2498_s28 }
  0x4c   :  { %p2505_p2 = por %p2504_p1, %p2503_p0 }
  0x4e   :  { %p2506_p3 = pnand %p2505_p2, %p2499_p13 }
  0x50   :  { %2509 = shalt.err (!%p2506_p3)
}
  0x51   :  { %49 = dma.hbm_to_vmem [thread:$0]  %s3564_s1, 640, %s2978_s23, [#allocation11], %s2802_s30, %s2802_s30, %s2803_s0  }
  0x52   :  { %s2806_s4 = smov [#allocation15]   ;;  %s2807_s24 = smov [#allocation18]  }
  0x53   :  { %s71_s9 = sshll.u32 %s2806_s4, 4  ;;  %s99_s5 = sshll.u32 %s2807_s24, 4  ;;  %s72_s9 = int_to_ptr.vmem [resolvable:$true] %s71_s9  ;;  %s3015_s5 = int_to_ptr.vmem [resolvable:$true] %s99_s5 }
  0x54   :  { %s2510_s2 = scalar_lea.hbm %s3542_s7, 2560 }
  0x55   :  { %p2511_p4 = scmp.ne.s32.totalorder %s3542_s7, %s2510_s2  ;;  %p2514_p5 = scmp.lt.u32.totalorder %s2510_s2, %s3542_s7 }
  0x57   :  { %p2516_p6 = pnand %p2514_p5, %p2511_p4 }
  0x59   :  { %2519 = shalt.err (!%p2516_p6)
}
  0x5a   :  { %s2520_s23 = scalar_lea.vmem %s72_s9, 2560  ;;  %p2525_p8 = scmp.lt.s32.totalorder %s72_s9, %s72_s9 }
  0x5b   :  { %p2521_p7 = scmp.ne.s32.totalorder %s72_s9, %s2520_s23  ;;  %p2526_p9 = scmp.lt.s32.totalorder %s2520_s23, %s2520_s23 }
  0x5d   :  { %p2527_p10 = por %p2526_p9, %p2525_p8 }
  0x5f   :  { %p2528_p11 = pnand %p2527_p10, %p2521_p7 }
  0x61   :  { %2531 = shalt.err (!%p2528_p11)
}
  0x62   :  { %77 = dma.hbm_to_vmem [thread:$0]  %s3542_s7, 2560, %s72_s9, [#allocation14], %s2802_s30, %s2802_s30, %s2803_s0  }
  0x63   :  { %s2532_s4 = scalar_lea.hbm %s3546_s11, 2560 }
  0x64   :  { %p2533_p12 = scmp.ne.s32.totalorder %s3546_s11, %s2532_s4  ;;  %p2536_p13 = scmp.lt.u32.totalorder %s2532_s4, %s3546_s11 }
  0x66   :  { %p2538_p0 = pnand %p2536_p13, %p2533_p12 }
  0x68   :  { %2541 = shalt.err (!%p2538_p0)
}
  0x69   :  { %s2542_s25 = scalar_lea.vmem %s3015_s5, 2560  ;;  %p2547_p2 = scmp.lt.s32.totalorder %s3015_s5, %s3015_s5 }
  0x6a   :  { %p2543_p1 = scmp.ne.s32.totalorder %s3015_s5, %s2542_s25  ;;  %p2548_p3 = scmp.lt.s32.totalorder %s2542_s25, %s2542_s25 }
  0x6c   :  { %p2549_p4 = por %p2548_p3, %p2547_p2 }
  0x6e   :  { %p2550_p5 = pnand %p2549_p4, %p2543_p1 }
  0x70   :  { %2553 = shalt.err (!%p2550_p5)
}
  0x71   :  { %105 = dma.hbm_to_vmem [thread:$0]  %s3546_s11, 2560, %s3015_s5, [#allocation17], %s2802_s30, %s2802_s30, %s2803_s0  }
  0x72   :  { %s2808_s3 = smov [#allocation21]   ;;  %s2554_s1 = scalar_lea.hbm %s3550_s15, 2560 }
  0x73   :  { %s127_s26 = sshll.u32 %s2808_s3, 4  ;;  %p2555_p6 = scmp.ne.s32.totalorder %s3550_s15, %s2554_s1  ;;  %s128_s26 = int_to_ptr.vmem [resolvable:$true] %s127_s26 }
  0x74   :  { %p2558_p7 = scmp.lt.u32.totalorder %s2554_s1, %s3550_s15 }
  0x76   :  { %p2560_p8 = pnand %p2558_p7, %p2555_p6 }
  0x78   :  { %2563 = shalt.err (!%p2560_p8)
}
  0x79   :  { %s2564_s24 = scalar_lea.vmem %s128_s26, 2560  ;;  %p2569_p10 = scmp.lt.s32.totalorder %s128_s26, %s128_s26 }
  0x7a   :  { %p2565_p9 = scmp.ne.s32.totalorder %s128_s26, %s2564_s24  ;;  %p2570_p11 = scmp.lt.s32.totalorder %s2564_s24, %s2564_s24 }
  0x7c   :  { %p2571_p12 = por %p2570_p11, %p2569_p10 }
  0x7e   :  { %p2572_p13 = pnand %p2571_p12, %p2565_p9 }
  0x80   :  { %2575 = shalt.err (!%p2572_p13)
}
  0x81   :  { %133 = dma.hbm_to_vmem [thread:$0]  %s3550_s15, 2560, %s128_s26, [#allocation20], %s2802_s30, %s2802_s30, %s2803_s0  }
  0x82   :  { %2704 = dma.done.wait [#allocation11], 640  }
  0x83   :  { %2705 = vsyncadd [#allocation11], 4294966656 }
  0x84   :  { %2706 = dma.done.wait [#allocation14], 5120  }
  0x85   :  { %2707 = vsyncadd [#allocation14], 4294962176 }
  0x86   :  { %2708 = dma.done.wait [#allocation17], 5120  }
  0x87   :  { %2709 = vsyncadd [#allocation17], 4294962176 }
  0x88   :  { %2710 = dma.done.wait [#allocation20], 5120  }
  0x89   :  { %2711 = vsyncadd [#allocation20], 4294962176  ;;  %v3067_v0 = vmov 0.0   ;;  %v3069_v1 = vmov 0.0   ;;  %v3071_v2 = vmov 0.0   ;;  %v3073_v3 = vmov 0.0  }
  0x8a   :  { %s3075_s22 = smov 0  }
  0x8b LB: > { %s3565_s0 = sld [smem:[#allocation32_spill]]  ;;  %v2809_v7 = vmov 0.0|0.0   ;;  %v299_v10 = vld [vmem:[#allocation10] sm:$0xff]  ;;  %v300_v11 = vld [vmem:[#allocation10 + $0x8] sm:$0xff]  ;;  %s2810_s26 = smov 40   ;;  %v301_v13 = vld [vmem:[#allocation10 + $0x10] sm:$0xff]  ;;  %s2734_s22 = sphi %s3075_s22, %s166_s22   ;;  %v2730_v3 = vphi %v3073_v3, %v290_v3   ;;  %v2726_v2 = vphi %v3071_v2, %v284_v2   ;;  %v2722_v1 = vphi %v3069_v1, %v407_v1   ;;  %v2718_v0 = vphi %v3067_v0, %v401_v0  }
  0x8c   : > { %1905 = vmatprep.subr.bf16.mxu0 %v2809_v7  ;;  %1911 = vmatprep.subr.bf16.mxu1 %v2809_v7  ;;  %v1912_v12 = vpack.c.bf16 %v300_v11, %v299_v10  ;;  %v302_v14 = vld [vmem:[#allocation10 + $0x18] sm:$0xff]  ;;  %vm2811_vm0 = vmmov 0   ;;  %v2812_v16 = vmov 0.0   ;;  %v303_v19 = vld [vmem:[#allocation10 + $0x20] sm:$0xff]  ;;  %s1744_s1 = sshll.u32 %s2734_s22, 1  ;;  %s171_s28 = ssub.s32 31, %s2734_s22 }
  0x8d   : > { %176 = vrot.lane.b32.xlu0 %v2730_v3, %s2810_s26  ;;  %1870 = vmatprep.mubr.msk.f32.mxu0 %vm2811_vm0, %v2812_v16  ;;  %v1915_v17 = vpack.c.bf16 %v302_v14, %v301_v13  ;;  %s3566_s4 = sld [smem:[#allocation31_spill]]  ;;  %s3110_s11 = sshll.u32 %s171_s28, 1  ;;  %vm179_vm1 = vcmask 64512   ;;  %vm193_vm2 = vcmask 326656   ;;  %vm413_vm3 = vcmask 254976  }
  0x8e   : > { %1913 = vmatpush3.bf16.msra.mxu1 %v1912_v12  ;;  %1883 = vmatprep.mubr.msk.f32.mxu1 %vm2811_vm0, %v2812_v16  ;;  %s3567_s25 = sld [smem:[#allocation33_spill]]  ;;  %s3568_s3 = sld [smem:[#allocation35_spill]] }
  0x8f   : > { %1914 = vmatprep.subr.bf16.mxu1 %v2809_v7  ;;  %s2814_s27 = smov 32   ;;  %s412_s23 = scalar_lea.vmem [#allocation2], %s1744_s1 }
  0x90   : > { %s419_s28 = scalar_lea.vmem [#allocation3], %s3110_s11  ;;  %s166_s22 = sadd.s32 1, %s2734_s22  }
  0x91   : > { %v181_v4 = vld [vmem:[%s3565_s0] sm:$0xff]  ;;  %v182_v5 = vld [vmem:[%s3565_s0 + $0x8] sm:$0xff]  ;;  %v183_v6 = vld [vmem:[%s3565_s0 + $0x10] sm:$0xff]  ;;  %295 = vrot.lane.b32.xlu0 %v2722_v1, %s2810_s26  ;;  %s2813_s26 = smov 64   ;;  %p163_p0 = scmp.ge.s32.totalorder %s166_s22, 32  }
  0x92   : > { %v1906_v8 = vpack.c.bf16 %v182_v5, %v181_v4  ;;  %v184_v9 = vld [vmem:[%s3565_s0 + $0x18] sm:$0xff]  ;;  %v185_v18 = vld [vmem:[%s3565_s0 + $0x20] sm:$0xff]  ;;  %1916 = vmatpush3.bf16.msra.mxu1 %v1915_v17  ;;  %v3144_v58 = vmov (%p163_p0), 0.0   ;;  %v3146_v59 = vmov (%p163_p0), 0.0   ;;  %v3148_v60 = vmov (%p163_p0), 0.0  }
  0x93   : > { %v1909_v15 = vpack.c.bf16 %v184_v9, %v183_v6  ;;  %1881 = vmatprep.subr.mxu1 %v2812_v16  ;;  %s173_s24 = scalar_lea.vmem %s3566_s4, %s1744_s1  ;;  %s292_s30 = scalar_lea.vmem %s3566_s4, %s3110_s11  ;;  %v3150_v61 = vmov (%p163_p0), 0.0  }
  0x94   : > { %1907 = vmatpush3.bf16.msra.mxu0 %v1906_v8  ;;  %v174_v20 = vld [vmem:[%s173_s24] sm:$0x3]  ;;  %s3152_s1 = smov (%p163_p0), 0  }
  0x95   : > { %1908 = vmatprep.subr.bf16.mxu0 %v2809_v7  ;;  %v293_v23 = vld [vmem:[%s292_s30] sm:$0x3] }
  0x96   : > { %1882 = vmatpush3.msra.mxu1 %v303_v19  ;;  %v1745_v26 = vld [vmem:[%s3567_s25] ss:$0 sm:$0xff] }
  0x97   : > { %v1749_v30 = vld [vmem:[%s3568_s3] ss:$0 sm:$0xff] }
  0x98   : > { %1910 = vmatpush3.bf16.msra.mxu0 %v1909_v15 }
  0x99   : > { %1868 = vmatprep.subr.mxu0 %v2812_v16 }
  0x9c   : > { %1869 = vmatpush3.msra.mxu0 %v185_v18 }
  0xff   : > { %v177_v21 = vpop.permute.xlu0 %176 }
 0x100   : > { %v180_v22 = vsel %vm179_vm1, %v174_v20, %v177_v21 }
 0x101   : > { %1871 = vmatmul.mubr.msk.f32.vlgmr.msra.gmra.mrb[0].mxu0 %vm193_vm2, %v180_v22 }
 0x103   : > { %v296_v24 = vpop.permute.xlu0 %295 }
 0x104   : > { %v298_v25 = vsel %vm179_vm1, %v293_v23, %v296_v24 }
 0x105   : > { %1884 = vmatmul.mubr.msk.f32.vlgmr.msra.gmra.mrb[0].mxu1 %vm193_vm2, %v298_v25 }
 0x1d4   : > { %v263_v27 = vpop.f32.mrb[0].mxu0 }
 0x1d5   : > { %v264_v28 = vadd.f32 %v1745_v26, %v263_v27  ;;  %v1872_v29 = vpop.f32.mrb[1].mxu0 }
 0x1d7   : > { %2313 = vtanh.f32 %v264_v28  ;;  %v1747_v36 = vmul.f32 -1.442695, %v264_v28 }
 0x1d8   : > { %v380_v31 = vpop.f32.mrb[0].mxu1 }
 0x1d9   : > { %v381_v32 = vadd.f32 %v1749_v30, %v380_v31  ;;  %v1885_v33 = vpop.f32.mrb[1].mxu1 }
 0x1db   : > { %2315 = vtanh.f32 %v381_v32  ;;  %v1751_v37 = vmul.f32 -1.442695, %v381_v32 }
 0x1dc   : > { %2317 = vpow2.f32 %v1747_v36 }
 0x1dd   : > { %2319 = vpow2.f32 %v1751_v37 }
 0x1e1   : > { %v2314_v34 = vpop.eup %2313 }
 0x1e2   : > { %276 = vrot.lane.b32.xlu1 %v2314_v34, %s2813_s26 }
 0x1e5   : > { %v2316_v35 = vpop.eup %2315 }
 0x1e6   : > { %393 = vrot.lane.b32.xlu1 %v2316_v35, %s2813_s26  ;;  %v2318_v38 = vpop.eup %2317 }
 0x1e7   : > { %v270_v39 = vadd.f32 1.0, %v2318_v38  ;;  %v2320_v40 = vpop.eup %2319 }
 0x1e8   : > { %v387_v41 = vadd.f32 1.0, %v2320_v40 }
 0x1e9   : > { %2321 = vrcp.f32 %v270_v39 }
 0x1ea   : > { %2323 = vrcp.f32 %v387_v41 }
 0x1f3   : > { %v2322_v42 = vpop.eup %2321 }
 0x1f4   : > { %v2324_v45 = vpop.eup %2323  ;;  %v274_v48 = vmul.f32 %v2726_v2, %v2322_v42 }
 0x1f5   : > { %v391_v50 = vmul.f32 %v2718_v0, %v2324_v45 }
 0x254   : > { %v277_v43 = vpop.permute.xlu1 %276 }
 0x255   : > { %v279_v44 = vmul.f32 %v2322_v42, %v277_v43 }
 0x257   : > { %281 = vrot.lane.b32.xlu0 %v279_v44, %s2814_s27 }
 0x258   : > { %v394_v46 = vpop.permute.xlu1 %393 }
 0x259   : > { %v396_v47 = vmul.f32 %v2324_v45, %v394_v46 }
 0x25b   : > { %398 = vrot.lane.b32.xlu1 %v396_v47, %s2814_s27 }
 0x2c9   : > { %v282_v49 = vpop.permute.xlu0 %281 }
 0x2ca   : > { %v284_v2 = vadd.f32 %v282_v49, %v274_v48  }
 0x2cc   : > { %2325 = vtanh.f32 %v284_v2 }
 0x2cd   : > { %v399_v51 = vpop.permute.xlu1 %398 }
 0x2ce   : > { %v401_v0 = vadd.f32 %v399_v51, %v391_v50  }
 0x2d0   : > { %2327 = vtanh.f32 %v401_v0 }
 0x2d6   : > { %v2326_v52 = vpop.eup %2325 }
 0x2d7   : > { %287 = vrot.lane.b32.xlu0 %v2326_v52, %s2813_s26 }
 0x2da   : > { %v2328_v53 = vpop.eup %2327 }
 0x2db   : > { %404 = vrot.lane.b32.xlu1 %v2328_v53, %s2813_s26 }
 0x349   : > { %v288_v54 = vpop.permute.xlu0 %287 }
 0x34a   : > { %v290_v3 = vmul.f32 %v2322_v42, %v288_v54  }
 0x34c   : > { %409 = vrot.lane.b32.xlu0 %v290_v3, %s2814_s27 }
 0x34d   : > { %v405_v55 = vpop.permute.xlu1 %404 }
 0x34e   : > { %v407_v1 = vmul.f32 %v2324_v45, %v405_v55  }
 0x350   : > { %416 = vrot.lane.b32.xlu1 %v407_v1, %s2814_s27 }
 0x3bd   :  { %165 = sbr.rel (!%p163_p0) target bundleno = 139 (0x8b), region = 205 }
 0x3be   : > { %v410_v56 = vpop.permute.xlu0 %409 }
 0x3bf   : > { %414 = vst.msk [vmem:[%s412_s23] sm:$0x3] %vm413_vm3, %v410_v56 }
 0x3c2   : > { %v417_v57 = vpop.permute.xlu1 %416 }
 0x3c3   : > { %420 = vst.msk [vmem:[%s419_s28] sm:$0x3] %vm413_vm3, %v417_v57 }
 0x3c4 LB: > { %v465_v62 = vld [vmem:[#allocation13] sm:$0xff]  ;;  %v466_v63 = vld [vmem:[#allocation13 + $0x8] sm:$0xff]  ;;  %v2815_v1 = vmov 0.0|0.0   ;;  %v467_v4 = vld [vmem:[#allocation13 + $0x10] sm:$0xff]  ;;  %s431_s22 = ssub.s32 15, %s2754_s1  ;;  %s1821_s0 = sshll.u32 %s2754_s1, 2  ;;  %s2754_s1 = sphi %s3152_s1, %s426_s1   ;;  %v2750_v61 = vphi %v3150_v61, %v587_v61   ;;  %v2746_v60 = vphi %v3148_v60, %v581_v60   ;;  %v2742_v59 = vphi %v3146_v59, %v740_v59   ;;  %v2738_v58 = vphi %v3144_v58, %v734_v58  }
 0x3c5   : > { %v618_v0 = vld [vmem:[#allocation15] sm:$0xff]  ;;  %1917 = vmatprep.subr.bf16.mxu0 %v2815_v1  ;;  %v1918_v2 = vpack.c.bf16 %v466_v63, %v465_v62  ;;  %1947 = vmatprep.subr.bf16.mxu1 %v2815_v1  ;;  %v619_v3 = vld [vmem:[#allocation15 + $0x8] sm:$0xff]  ;;  %v468_v5 = vld [vmem:[#allocation13 + $0x18] sm:$0xff]  ;;  %s436_s13 = scalar_lea.vmem [#allocation3], %s1821_s0  ;;  %s3175_s21 = sshll.u32 %s431_s22, 2  ;;  %vm456_vm4 = vcmask 261120  }
 0x3c6   : > { %v1948_v6 = vpack.c.bf16 %v619_v3, %v618_v0  ;;  %v620_v7 = vld [vmem:[#allocation15 + $0x10] sm:$0xff]  ;;  %v621_v8 = vld [vmem:[#allocation15 + $0x18] sm:$0xff]  ;;  %v1921_v9 = vpack.c.bf16 %v468_v5, %v467_v4  ;;  %v469_v12 = vld [vmem:[#allocation13 + $0x20] sm:$0xff]  ;;  %s592_s4 = scalar_lea.vmem [#allocation3], %s3175_s21  ;;  %s3180_s24 = scalar_lea.vmem [#allocation2], %s1821_s0  ;;  %vm458_vm5 = vcmask 523264  }
 0x3c7   : > { %1919 = vmatpush1.bf16.msra.mxu0 %v1918_v2  ;;  %v1951_v11 = vpack.c.bf16 %v621_v8, %v620_v7  ;;  %v470_v13 = vld [vmem:[#allocation13 + $0x28] sm:$0xff]  ;;  %v622_v15 = vld [vmem:[#allocation15 + $0x20] sm:$0xff]  ;;  %s590_s11 = scalar_lea.vmem [#allocation2], %s3175_s21  ;;  %v471_v25 = vld [vmem:[#allocation13 + $0x30] sm:$0xff]  ;;  %s2816_s5 = smov 32   ;;  %vm460_vm6 = vcmask 785408  }
 0x3c8   : > { %1949 = vmatpush1.bf16.msra.mxu1 %v1948_v6  ;;  %1920 = vmatprep.subr.bf16.mxu0 %v2815_v1  ;;  %v623_v16 = vld [vmem:[#allocation15 + $0x28] sm:$0xff]  ;;  %v1924_v23 = vpack.c.bf16 %v470_v13, %v469_v12  ;;  %v472_v26 = vld [vmem:[#allocation13 + $0x38] sm:$0xff]  ;;  %s2817_s15 = smov 96   ;;  %v624_v28 = vld [vmem:[#allocation15 + $0x30] sm:$0xff]  ;;  %s2818_s30 = smov 64  }
 0x3c9   : > { %1950 = vmatprep.subr.bf16.mxu1 %v2815_v1  ;;  %v1756_v19 = vld [vmem:[%s3180_s24 + $0x2] sm:$0x3]  ;;  %v1954_v24 = vpack.c.bf16 %v623_v16, %v622_v15  ;;  %v625_v29 = vld [vmem:[#allocation15 + $0x38] sm:$0xff]  ;;  %v1927_v30 = vpack.c.bf16 %v472_v26, %v471_v25  ;;  %v473_v32 = vld [vmem:[#allocation13 + $0x40] sm:$0xff]  ;;  %s1752_s9 = sshll.u32 %s2754_s1, 1  ;;  %s1763_s3 = sshll.u32 %s431_s22, 1 }
 0x3ca   : > { %v437_v10 = vld [vmem:[%s436_s13] sm:$0x3]  ;;  %v1759_v14 = vld [vmem:[%s436_s13 + $0x2] sm:$0x3]  ;;  %v1957_v31 = vpack.c.bf16 %v625_v29, %v624_v28  ;;  %v626_v34 = vld [vmem:[#allocation15 + $0x40] sm:$0xff]  ;;  %s745_s26 = scalar_lea.vmem [#allocation4], %s1752_s9 }
 0x3cb   : > { %v593_v17 = vld [vmem:[%s592_s4] sm:$0x3]  ;;  %v1770_v18 = vld [vmem:[%s592_s4 + $0x2] sm:$0x3]  ;;  %1922 = vmatpush1.bf16.msra.mxu0 %v1921_v9  ;;  %v475_v38 = vld [vmem:[#allocation13 + $0x50] sm:$0xff]  ;;  %s752_s27 = scalar_lea.vmem [#allocation5], %s1763_s3 }
 0x3cc   : > { %v2329_v20 = vpack.i.bf16 %v593_v17, %v437_v10  ;;  %v2339_v21 = vpack.i.bf16 %v1770_v18, %v1759_v14  ;;  %v1767_v22 = vld [vmem:[%s590_s11 + $0x2] sm:$0x3]  ;;  %1952 = vmatpush1.bf16.msra.mxu1 %v1951_v11  ;;  %1923 = vmatprep.subr.bf16.mxu0 %v2815_v1  ;;  %v476_v39 = vld [vmem:[#allocation13 + $0x58] sm:$0xff]  ;;  %v628_v40 = vld [vmem:[#allocation15 + $0x50] sm:$0xff]  ;;  %s426_s1 = sadd.s32 1, %s2754_s1  }
 0x3cd   : > { %v2334_v27 = vpack.i.bf16 %v1767_v22, %v1756_v19  ;;  %1953 = vmatprep.subr.bf16.mxu1 %v2815_v1  ;;  %v474_v33 = vld [vmem:[#allocation13 + $0x48] sm:$0xff]  ;;  %v629_v41 = vld [vmem:[#allocation15 + $0x58] sm:$0xff]  ;;  %v1933_v42 = vpack.c.bf16 %v476_v39, %v475_v38  ;;  %v477_v44 = vld [vmem:[#allocation13 + $0x60] sm:$0xff]  ;;  %p423_p1 = scmp.ge.s32.totalorder %s426_s1, 16  }
 0x3ce   : > { %2330 = vrot.lane.b32.xlu0 %v2329_v20, %s2816_s5  ;;  %2340 = vrot.lane.b32.xlu1 %v2339_v21, %s2817_s15  ;;  %v627_v35 = vld [vmem:[#allocation15 + $0x48] sm:$0xff]  ;;  %v1930_v36 = vpack.c.bf16 %v474_v33, %v473_v32  ;;  %v1963_v43 = vpack.c.bf16 %v629_v41, %v628_v40  ;;  %v630_v46 = vld [vmem:[#allocation15 + $0x60] sm:$0xff]  ;;  %v479_v50 = vld [vmem:[#allocation13 + $0x70] sm:$0xff]  ;;  %s3259_s23 = smov (%p423_p1), 0  }
 0x3cf   : > { %1925 = vmatpush1.bf16.msra.mxu0 %v1924_v23  ;;  %v1960_v37 = vpack.c.bf16 %v627_v35, %v626_v34  ;;  %v478_v45 = vld [vmem:[#allocation13 + $0x68] sm:$0xff]  ;;  %v480_v51 = vld [vmem:[#allocation13 + $0x78] sm:$0xff]  ;;  %v632_v52 = vld [vmem:[#allocation15 + $0x70] sm:$0xff] }
 0x3d0   : > { %1955 = vmatpush1.bf16.msra.mxu1 %v1954_v24  ;;  %1926 = vmatprep.subr.bf16.mxu0 %v2815_v1  ;;  %v631_v47 = vld [vmem:[#allocation15 + $0x68] sm:$0xff]  ;;  %v1936_v48 = vpack.c.bf16 %v478_v45, %v477_v44  ;;  %v633_v53 = vld [vmem:[#allocation15 + $0x78] sm:$0xff]  ;;  %v1939_v54 = vpack.c.bf16 %v480_v51, %v479_v50  ;;  %v481_v56 = vld [vmem:[#allocation13 + $0x80] sm:$0xff] }
 0x3d1   : > { %1956 = vmatprep.subr.bf16.mxu1 %v2815_v1  ;;  %v1966_v49 = vpack.c.bf16 %v631_v47, %v630_v46  ;;  %v1969_v55 = vpack.c.bf16 %v633_v53, %v632_v52  ;;  %v482_v57 = vld [vmem:[#allocation13 + $0x88] sm:$0xff]  ;;  %v483_v0 = vld [vmem:[#allocation13 + $0x90] sm:$0xff]  ;;  %v484_v2 = vld [vmem:[#allocation13 + $0x98] sm:$0xff] }
 0x3d2   : > { %2335 = vrot.lane.b32.xlu0 %v2334_v27, %s2818_s30  ;;  %463 = vrot.lane.b32.xlu1 %v2750_v61, %s2816_s5  ;;  %v635_v61 = vld [vmem:[#allocation15 + $0x88] sm:$0xff]  ;;  %v1942_v62 = vpack.c.bf16 %v482_v57, %v481_v56  ;;  %v636_v3 = vld [vmem:[#allocation15 + $0x90] sm:$0xff]  ;;  %v637_v4 = vld [vmem:[#allocation15 + $0x98] sm:$0xff]  ;;  %v1945_v5 = vpack.c.bf16 %v484_v2, %v483_v0  ;;  %v3251_v57 = vmov (%p423_p1), 0.0   ;;  %v3257_v0 = vmov (%p423_p1), 0.0  }
 0x3d3   : > { %1928 = vmatpush1.bf16.msra.mxu0 %v1927_v30  ;;  %v1975_v6 = vpack.c.bf16 %v637_v4, %v636_v3  ;;  %v435_v11 = vld [vmem:[%s3180_s24] sm:$0x3] }
 0x3d4   : > { %1958 = vmatpush1.bf16.msra.mxu1 %v1957_v31  ;;  %1929 = vmatprep.subr.bf16.mxu0 %v2815_v1  ;;  %v591_v12 = vld [vmem:[%s590_s11] sm:$0x3] }
 0x3d5   : > { %1959 = vmatprep.subr.bf16.mxu1 %v2815_v1  ;;  %v1760_v25 = vld [vmem:[%s3541_s6] ss:$0 sm:$0xff] }
 0x3d6   : > { %616 = vrot.lane.b32.xlu0 %v2742_v59, %s2816_s5  ;;  %v634_v59 = vld [vmem:[#allocation15 + $0x80] sm:$0xff]  ;;  %v1771_v26 = vld [vmem:[%s3543_s8] ss:$0 sm:$0xff] }
 0x3d7   : > { %1931 = vmatpush1.bf16.msra.mxu0 %v1930_v36  ;;  %v1972_v63 = vpack.c.bf16 %v635_v61, %v634_v59 }
 0x3d8   : > { %1961 = vmatpush1.bf16.msra.mxu1 %v1960_v37  ;;  %1932 = vmatprep.subr.bf16.mxu0 %v2815_v1 }
 0x3d9   : > { %1962 = vmatprep.subr.bf16.mxu1 %v2815_v1 }
 0x3db   : > { %1934 = vmatpush1.bf16.msra.mxu0 %v1933_v42 }
 0x3dc   : > { %1964 = vmatpush1.bf16.msra.mxu1 %v1963_v43  ;;  %1935 = vmatprep.subr.bf16.mxu0 %v2815_v1 }
 0x3dd   : > { %1965 = vmatprep.subr.bf16.mxu1 %v2815_v1 }
 0x3df   : > { %1937 = vmatpush1.bf16.msra.mxu0 %v1936_v48 }
 0x3e0   : > { %1967 = vmatpush1.bf16.msra.mxu1 %v1966_v49  ;;  %1938 = vmatprep.subr.bf16.mxu0 %v2815_v1 }
 0x3e1   : > { %1968 = vmatprep.subr.bf16.mxu1 %v2815_v1 }
 0x3e3   : > { %1940 = vmatpush1.bf16.msra.mxu0 %v1939_v54 }
 0x3e4   : > { %1970 = vmatpush1.bf16.msra.mxu1 %v1969_v55  ;;  %1941 = vmatprep.subr.bf16.mxu0 %v2815_v1 }
 0x3e5   : > { %1971 = vmatprep.subr.bf16.mxu1 %v2815_v1 }
 0x3e7   : > { %1943 = vmatpush1.bf16.msra.mxu0 %v1942_v62  ;;  %v3253_v62 = vmov (%p423_p1), 0.0  }
 0x3e8   : > { %1973 = vmatpush1.bf16.msra.mxu1 %v1972_v63  ;;  %1944 = vmatprep.subr.bf16.mxu0 %v2815_v1  ;;  %v3255_v63 = vmov (%p423_p1), 0.0  }
 0x3e9   : > { %1974 = vmatprep.subr.bf16.mxu1 %v2815_v1 }
 0x3eb   : > { %1946 = vmatpush1.bf16.msra.mxu0 %v1945_v5 }
 0x3ec   : > { %1976 = vmatpush1.bf16.msra.mxu1 %v1975_v6 }
 0x440   : > { %v2331_v7 = vpop.permute.xlu0 %2330  ;;  %v2341_v8 = vpop.permute.xlu1 %2340 }
 0x441   : > { %v2333_v9 = vunpack.i.h.bf16 %v2331_v7  ;;  %v2332_v10 = vunpack.i.l.bf16 %v2331_v7  ;;  %v2343_v13 = vunpack.i.h.bf16 %v2341_v8  ;;  %v2342_v14 = vunpack.i.l.bf16 %v2341_v8 }
 0x443   : > { %v457_v1 = vsel %vm456_vm4, %v435_v11, %v2332_v10  ;;  %v612_v19 = vsel %vm456_vm4, %v591_v12, %v2333_v9 }
 0x444   : > { %v2336_v15 = vpop.permute.xlu0 %2335  ;;  %v464_v16 = vpop.permute.xlu1 %463 }
 0x445   : > { %v2338_v17 = vunpack.i.h.bf16 %v2336_v15  ;;  %v2337_v18 = vunpack.i.l.bf16 %v2336_v15  ;;  %1761 = vmatprep.mubr.msk.f32.mxu0 %vm456_vm4, %v464_v16 }
 0x447   : > { %v459_v20 = vsel %vm458_vm5, %v457_v1, %v2337_v18  ;;  %v613_v21 = vsel %vm458_vm5, %v612_v19, %v2338_v17 }
 0x448   : > { %v617_v22 = vpop.permute.xlu0 %616  ;;  %v461_v23 = vsel %vm460_vm6, %v459_v20, %v2342_v14  ;;  %v614_v24 = vsel %vm460_vm6, %v613_v21, %v2343_v13 }
 0x449   : > { %559 = vmatmul.mubr.f32.vlgmr.msra.gmra.mrb[0].mxu0 %v461_v23  ;;  %1772 = vmatprep.mubr.msk.f32.mxu1 %vm456_vm4, %v617_v22 }
 0x44a   : > { %712 = vmatmul.mubr.f32.vlgmr.msra.gmra.mrb[0].mxu1 %v614_v24 }
 0x51c   : > { %v560_v27 = vpop.f32.mrb[0].mxu0 }
 0x51d   : > { %v561_v28 = vadd.f32 %v1760_v25, %v560_v27  ;;  %v562_v29 = vpop.f32.mrb[1].mxu0  ;;  %v713_v30 = vpop.f32.mrb[0].mxu1 }
 0x51e   : > { %v714_v31 = vadd.f32 %v1771_v26, %v713_v30  ;;  %v715_v32 = vpop.f32.mrb[1].mxu1 }
 0x51f   : > { %2344 = vtanh.f32 %v561_v28  ;;  %v1762_v35 = vmul.f32 -1.442695, %v561_v28 }
 0x520   : > { %2346 = vtanh.f32 %v714_v31  ;;  %v1773_v36 = vmul.f32 -1.442695, %v714_v31 }
 0x521   : > { %2348 = vpow2.f32 %v1762_v35 }
 0x522   : > { %2350 = vpow2.f32 %v1773_v36 }
 0x529   : > { %v2345_v33 = vpop.eup %2344 }
 0x52a   : > { %v2347_v34 = vpop.eup %2346  ;;  %573 = vrot.lane.b32.xlu1 %v2345_v33, %s2818_s30 }
 0x52b   : > { %726 = vrot.lane.b32.xlu0 %v2347_v34, %s2818_s30  ;;  %v2349_v37 = vpop.eup %2348 }
 0x52c   : > { %v2351_v38 = vpop.eup %2350  ;;  %v567_v39 = vadd.f32 1.0, %v2349_v37 }
 0x52d   : > { %v720_v40 = vadd.f32 1.0, %v2351_v38 }
 0x52e   : > { %2352 = vrcp.f32 %v567_v39 }
 0x52f   : > { %2354 = vrcp.f32 %v720_v40 }
 0x538   : > { %v2353_v41 = vpop.eup %2352 }
 0x539   : > { %v2355_v43 = vpop.eup %2354  ;;  %v571_v47 = vmul.f32 %v2746_v60, %v2353_v41 }
 0x53a   : > { %v724_v49 = vmul.f32 %v2738_v58, %v2355_v43 }
 0x59c   : > { %v574_v42 = vpop.permute.xlu1 %573 }
 0x59d   : > { %v576_v44 = vmul.f32 %v2353_v41, %v574_v42  ;;  %v727_v45 = vpop.permute.xlu0 %726 }
 0x59e   : > { %v729_v46 = vmul.f32 %v2355_v43, %v727_v45 }
 0x59f   : > { %578 = vrot.lane.b32.xlu1 %v576_v44, %s2816_s5 }
 0x5a0   : > { %731 = vrot.lane.b32.xlu0 %v729_v46, %s2816_s5 }
 0x611   : > { %v579_v48 = vpop.permute.xlu1 %578 }
 0x612   : > { %v581_v60 = vadd.f32 %v579_v48, %v571_v47   ;;  %v732_v50 = vpop.permute.xlu0 %731 }
 0x613   : > { %v734_v58 = vadd.f32 %v732_v50, %v724_v49  }
 0x614   : > { %2356 = vtanh.f32 %v581_v60 }
 0x615   : > { %2358 = vtanh.f32 %v734_v58 }
 0x61e   : > { %v2357_v51 = vpop.eup %2356 }
 0x61f   : > { %v2359_v52 = vpop.eup %2358  ;;  %584 = vrot.lane.b32.xlu1 %v2357_v51, %s2818_s30 }
 0x620   : > { %737 = vrot.lane.b32.xlu0 %v2359_v52, %s2818_s30 }
 0x691   : > { %v585_v53 = vpop.permute.xlu1 %584 }
 0x692   : > { %v587_v61 = vmul.f32 %v2353_v41, %v585_v53   ;;  %v738_v54 = vpop.permute.xlu0 %737 }
 0x693   : > { %v740_v59 = vmul.f32 %v2355_v43, %v738_v54  }
 0x694   : > { %742 = vrot.lane.b32.xlu1 %v587_v61, %s2816_s5 }
 0x695   : > { %749 = vrot.lane.b32.xlu0 %v740_v59, %s2816_s5 }
 0x702   :  { %425 = sbr.rel (!%p423_p1) target bundleno = 964 (0x3c4), region = 216 }
 0x706   : > { %v743_v55 = vpop.permute.xlu1 %742 }
 0x707   : > { %747 = vst.msk [vmem:[%s745_s26] sm:$0x3] %vm413_vm3, %v743_v55  ;;  %v750_v56 = vpop.permute.xlu0 %749 }
 0x708   : > { %753 = vst.msk [vmem:[%s752_s27] sm:$0x3] %vm413_vm3, %v750_v56 }
 0x709 LB: > { %v798_v58 = vld [vmem:[#allocation16] sm:$0xff]  ;;  %v799_v60 = vld [vmem:[#allocation16 + $0x8] sm:$0xff]  ;;  %v2819_v61 = vmov 0.0|0.0   ;;  %v800_v4 = vld [vmem:[#allocation16 + $0x10] sm:$0xff]  ;;  %s764_s6 = ssub.s32 7, %s2774_s23  ;;  %s1827_s8 = sshll.u32 %s2774_s23, 2  ;;  %s2774_s23 = sphi %s3259_s23, %s759_s23   ;;  %v2770_v0 = vphi %v3257_v0, %v920_v0   ;;  %v2766_v63 = vphi %v3255_v63, %v914_v63   ;;  %v2762_v62 = vphi %v3253_v62, %v1073_v62   ;;  %v2758_v57 = vphi %v3251_v57, %v1067_v57  }
 0x70a   : > { %v951_v59 = vld [vmem:[#allocation18] sm:$0xff]  ;;  %1977 = vmatprep.subr.bf16.mxu0 %v2819_v61  ;;  %v1978_v2 = vpack.c.bf16 %v799_v60, %v798_v58  ;;  %2007 = vmatprep.subr.bf16.mxu1 %v2819_v61  ;;  %v952_v3 = vld [vmem:[#allocation18 + $0x8] sm:$0xff]  ;;  %v801_v5 = vld [vmem:[#allocation16 + $0x18] sm:$0xff]  ;;  %s769_s28 = scalar_lea.vmem [#allocation5], %s1827_s8  ;;  %s3282_s1 = sshll.u32 %s764_s6, 2 }
 0x70b   : > { %v2008_v6 = vpack.c.bf16 %v952_v3, %v951_v59  ;;  %v953_v7 = vld [vmem:[#allocation18 + $0x10] sm:$0xff]  ;;  %v954_v8 = vld [vmem:[#allocation18 + $0x18] sm:$0xff]  ;;  %v1981_v9 = vpack.c.bf16 %v801_v5, %v800_v4  ;;  %v802_v10 = vld [vmem:[#allocation16 + $0x20] sm:$0xff]  ;;  %s3285_s22 = scalar_lea.vmem [#allocation4], %s1827_s8  ;;  %s925_s0 = scalar_lea.vmem [#allocation5], %s3282_s1 }
 0x70c   : > { %1979 = vmatpush1.bf16.msra.mxu0 %v1978_v2  ;;  %v2011_v13 = vpack.c.bf16 %v954_v8, %v953_v7  ;;  %v803_v14 = vld [vmem:[#allocation16 + $0x28] sm:$0xff]  ;;  %v955_v16 = vld [vmem:[#allocation18 + $0x20] sm:$0xff]  ;;  %s923_s13 = scalar_lea.vmem [#allocation4], %s3282_s1  ;;  %v804_v24 = vld [vmem:[#allocation16 + $0x30] sm:$0xff]  ;;  %s2820_s21 = smov 32  }
 0x70d   : > { %2009 = vmatpush1.bf16.msra.mxu1 %v2008_v6  ;;  %1980 = vmatprep.subr.bf16.mxu0 %v2819_v61  ;;  %v956_v17 = vld [vmem:[#allocation18 + $0x28] sm:$0xff]  ;;  %v1984_v22 = vpack.c.bf16 %v803_v14, %v802_v10  ;;  %v805_v25 = vld [vmem:[#allocation16 + $0x38] sm:$0xff]  ;;  %s2821_s4 = smov 96   ;;  %v957_v27 = vld [vmem:[#allocation18 + $0x30] sm:$0xff]  ;;  %s2822_s24 = smov 64  }
 0x70e   : > { %v1778_v15 = vld [vmem:[%s3285_s22 + $0x2] sm:$0x3]  ;;  %2010 = vmatprep.subr.bf16.mxu1 %v2819_v61  ;;  %v2014_v23 = vpack.c.bf16 %v956_v17, %v955_v16  ;;  %v958_v28 = vld [vmem:[#allocation18 + $0x38] sm:$0xff]  ;;  %v1987_v29 = vpack.c.bf16 %v805_v25, %v804_v24  ;;  %v806_v31 = vld [vmem:[#allocation16 + $0x40] sm:$0xff]  ;;  %s1774_s29 = sshll.u32 %s2774_s23, 1  ;;  %s1785_s2 = sshll.u32 %s764_s6, 1 }
 0x70f   : > { %v770_v11 = vld [vmem:[%s769_s28] sm:$0x3]  ;;  %v1781_v12 = vld [vmem:[%s769_s28 + $0x2] sm:$0x3]  ;;  %v2017_v30 = vpack.c.bf16 %v958_v28, %v957_v27  ;;  %v959_v33 = vld [vmem:[#allocation18 + $0x40] sm:$0xff]  ;;  %s1078_s25 = scalar_lea.vmem [#allocation6], %s1774_s29 }
 0x710   : > { %v926_v18 = vld [vmem:[%s925_s0] sm:$0x3]  ;;  %v1792_v1 = vld [vmem:[%s925_s0 + $0x2] sm:$0x3]  ;;  %1982 = vmatpush1.bf16.msra.mxu0 %v1981_v9  ;;  %v808_v37 = vld [vmem:[#allocation16 + $0x50] sm:$0xff]  ;;  %s1085_s7 = scalar_lea.vmem [#allocation7], %s1785_s2 }
 0x711   : > { %v1789_v19 = vld [vmem:[%s923_s13 + $0x2] sm:$0x3]  ;;  %v2360_v20 = vpack.i.bf16 %v926_v18, %v770_v11  ;;  %v2370_v21 = vpack.i.bf16 %v1792_v1, %v1781_v12  ;;  %2012 = vmatpush1.bf16.msra.mxu1 %v2011_v13  ;;  %1983 = vmatprep.subr.bf16.mxu0 %v2819_v61  ;;  %v809_v38 = vld [vmem:[#allocation16 + $0x58] sm:$0xff]  ;;  %v961_v39 = vld [vmem:[#allocation18 + $0x50] sm:$0xff]  ;;  %s759_s23 = sadd.s32 1, %s2774_s23  }
 0x712   : > { %v2365_v26 = vpack.i.bf16 %v1789_v19, %v1778_v15  ;;  %2013 = vmatprep.subr.bf16.mxu1 %v2819_v61  ;;  %v807_v32 = vld [vmem:[#allocation16 + $0x48] sm:$0xff]  ;;  %v962_v40 = vld [vmem:[#allocation18 + $0x58] sm:$0xff]  ;;  %v1993_v41 = vpack.c.bf16 %v809_v38, %v808_v37  ;;  %v810_v43 = vld [vmem:[#allocation16 + $0x60] sm:$0xff]  ;;  %p756_p2 = scmp.ge.s32.totalorder %s759_s23, 8  }
 0x713   : > { %2361 = vrot.lane.b32.xlu0 %v2360_v20, %s2820_s21  ;;  %2371 = vrot.lane.b32.xlu1 %v2370_v21, %s2821_s4  ;;  %v960_v34 = vld [vmem:[#allocation18 + $0x48] sm:$0xff]  ;;  %v1990_v35 = vpack.c.bf16 %v807_v32, %v806_v31  ;;  %v2023_v42 = vpack.c.bf16 %v962_v40, %v961_v39  ;;  %v963_v45 = vld [vmem:[#allocation18 + $0x60] sm:$0xff]  ;;  %v812_v49 = vld [vmem:[#allocation16 + $0x70] sm:$0xff]  ;;  %s3366_s9 = smov (%p756_p2), 0  }
 0x714   : > { %1985 = vmatpush1.bf16.msra.mxu0 %v1984_v22  ;;  %v2020_v36 = vpack.c.bf16 %v960_v34, %v959_v33  ;;  %v811_v44 = vld [vmem:[#allocation16 + $0x68] sm:$0xff]  ;;  %v813_v50 = vld [vmem:[#allocation16 + $0x78] sm:$0xff]  ;;  %v965_v51 = vld [vmem:[#allocation18 + $0x70] sm:$0xff] }
 0x715   : > { %2015 = vmatpush1.bf16.msra.mxu1 %v2014_v23  ;;  %1986 = vmatprep.subr.bf16.mxu0 %v2819_v61  ;;  %v964_v46 = vld [vmem:[#allocation18 + $0x68] sm:$0xff]  ;;  %v1996_v47 = vpack.c.bf16 %v811_v44, %v810_v43  ;;  %v966_v52 = vld [vmem:[#allocation18 + $0x78] sm:$0xff]  ;;  %v1999_v53 = vpack.c.bf16 %v813_v50, %v812_v49  ;;  %v814_v55 = vld [vmem:[#allocation16 + $0x80] sm:$0xff] }
 0x716   : > { %2016 = vmatprep.subr.bf16.mxu1 %v2819_v61  ;;  %v2026_v48 = vpack.c.bf16 %v964_v46, %v963_v45  ;;  %v2029_v54 = vpack.c.bf16 %v966_v52, %v965_v51  ;;  %v815_v56 = vld [vmem:[#allocation16 + $0x88] sm:$0xff]  ;;  %v816_v59 = vld [vmem:[#allocation16 + $0x90] sm:$0xff]  ;;  %v817_v2 = vld [vmem:[#allocation16 + $0x98] sm:$0xff] }
 0x717   : > { %2366 = vrot.lane.b32.xlu0 %v2365_v26, %s2822_s24  ;;  %796 = vrot.lane.b32.xlu1 %v2770_v0, %s2820_s21  ;;  %v968_v0 = vld [vmem:[#allocation18 + $0x88] sm:$0xff]  ;;  %v2002_v58 = vpack.c.bf16 %v815_v56, %v814_v55  ;;  %v969_v3 = vld [vmem:[#allocation18 + $0x90] sm:$0xff]  ;;  %v970_v4 = vld [vmem:[#allocation18 + $0x98] sm:$0xff]  ;;  %v2005_v5 = vpack.c.bf16 %v817_v2, %v816_v59  ;;  %v3358_v56 = vmov (%p756_p2), 0.0   ;;  %v3364_v59 = vmov (%p756_p2), 0.0  }
 0x718   : > { %1988 = vmatpush1.bf16.msra.mxu0 %v1987_v29  ;;  %v2035_v6 = vpack.c.bf16 %v970_v4, %v969_v3  ;;  %v768_v11 = vld [vmem:[%s3285_s22] sm:$0x3] }
 0x719   : > { %2018 = vmatpush1.bf16.msra.mxu1 %v2017_v30  ;;  %1989 = vmatprep.subr.bf16.mxu0 %v2819_v61  ;;  %v924_v12 = vld [vmem:[%s923_s13] sm:$0x3] }
 0x71a   : > { %2019 = vmatprep.subr.bf16.mxu1 %v2819_v61  ;;  %v1782_v24 = vld [vmem:[%s3545_s10] ss:$0 sm:$0xff] }
 0x71b   : > { %949 = vrot.lane.b32.xlu0 %v2762_v62, %s2820_s21  ;;  %v967_v62 = vld [vmem:[#allocation18 + $0x80] sm:$0xff]  ;;  %v1793_v25 = vld [vmem:[%s3547_s12] ss:$0 sm:$0xff] }
 0x71c   : > { %1991 = vmatpush1.bf16.msra.mxu0 %v1990_v35  ;;  %v2032_v60 = vpack.c.bf16 %v968_v0, %v967_v62 }
 0x71d   : > { %2021 = vmatpush1.bf16.msra.mxu1 %v2020_v36  ;;  %1992 = vmatprep.subr.bf16.mxu0 %v2819_v61 }
 0x71e   : > { %2022 = vmatprep.subr.bf16.mxu1 %v2819_v61 }
 0x720   : > { %1994 = vmatpush1.bf16.msra.mxu0 %v1993_v41 }
 0x721   : > { %2024 = vmatpush1.bf16.msra.mxu1 %v2023_v42  ;;  %1995 = vmatprep.subr.bf16.mxu0 %v2819_v61 }
 0x722   : > { %2025 = vmatprep.subr.bf16.mxu1 %v2819_v61 }
 0x724   : > { %1997 = vmatpush1.bf16.msra.mxu0 %v1996_v47 }
 0x725   : > { %2027 = vmatpush1.bf16.msra.mxu1 %v2026_v48  ;;  %1998 = vmatprep.subr.bf16.mxu0 %v2819_v61 }
 0x726   : > { %2028 = vmatprep.subr.bf16.mxu1 %v2819_v61 }
 0x728   : > { %2000 = vmatpush1.bf16.msra.mxu0 %v1999_v53 }
 0x729   : > { %2030 = vmatpush1.bf16.msra.mxu1 %v2029_v54  ;;  %2001 = vmatprep.subr.bf16.mxu0 %v2819_v61 }
 0x72a   : > { %2031 = vmatprep.subr.bf16.mxu1 %v2819_v61 }
 0x72c   : > { %2003 = vmatpush1.bf16.msra.mxu0 %v2002_v58  ;;  %v3360_v58 = vmov (%p756_p2), 0.0  }
 0x72d   : > { %2033 = vmatpush1.bf16.msra.mxu1 %v2032_v60  ;;  %2004 = vmatprep.subr.bf16.mxu0 %v2819_v61  ;;  %v3362_v60 = vmov (%p756_p2), 0.0  }
 0x72e   : > { %2034 = vmatprep.subr.bf16.mxu1 %v2819_v61 }
 0x730   : > { %2006 = vmatpush1.bf16.msra.mxu0 %v2005_v5 }
 0x731   : > { %2036 = vmatpush1.bf16.msra.mxu1 %v2035_v6 }
 0x785   : > { %v2362_v7 = vpop.permute.xlu0 %2361  ;;  %v2372_v8 = vpop.permute.xlu1 %2371 }
 0x786   : > { %v2364_v9 = vunpack.i.h.bf16 %v2362_v7  ;;  %v2363_v10 = vunpack.i.l.bf16 %v2362_v7  ;;  %v2374_v13 = vunpack.i.h.bf16 %v2372_v8  ;;  %v2373_v14 = vunpack.i.l.bf16 %v2372_v8 }
 0x788   : > { %v790_v1 = vsel %vm456_vm4, %v768_v11, %v2363_v10  ;;  %v945_v61 = vsel %vm456_vm4, %v924_v12, %v2364_v9 }
 0x789   : > { %v2367_v15 = vpop.permute.xlu0 %2366  ;;  %v797_v16 = vpop.permute.xlu1 %796 }
 0x78a   : > { %v2369_v17 = vunpack.i.h.bf16 %v2367_v15  ;;  %v2368_v18 = vunpack.i.l.bf16 %v2367_v15  ;;  %1783 = vmatprep.mubr.msk.f32.mxu0 %vm456_vm4, %v797_v16 }
 0x78c   : > { %v792_v19 = vsel %vm458_vm5, %v790_v1, %v2368_v18  ;;  %v946_v20 = vsel %vm458_vm5, %v945_v61, %v2369_v17 }
 0x78d   : > { %v950_v21 = vpop.permute.xlu0 %949  ;;  %v794_v22 = vsel %vm460_vm6, %v792_v19, %v2373_v14  ;;  %v947_v23 = vsel %vm460_vm6, %v946_v20, %v2374_v13 }
 0x78e   : > { %892 = vmatmul.mubr.f32.vlgmr.msra.gmra.mrb[0].mxu0 %v794_v22  ;;  %1794 = vmatprep.mubr.msk.f32.mxu1 %vm456_vm4, %v950_v21 }
 0x78f   : > { %1045 = vmatmul.mubr.f32.vlgmr.msra.gmra.mrb[0].mxu1 %v947_v23 }
 0x861   : > { %v893_v26 = vpop.f32.mrb[0].mxu0 }
 0x862   : > { %v894_v27 = vadd.f32 %v1782_v24, %v893_v26  ;;  %v895_v28 = vpop.f32.mrb[1].mxu0  ;;  %v1046_v29 = vpop.f32.mrb[0].mxu1 }
 0x863   : > { %v1047_v30 = vadd.f32 %v1793_v25, %v1046_v29  ;;  %v1048_v31 = vpop.f32.mrb[1].mxu1 }
 0x864   : > { %2375 = vtanh.f32 %v894_v27  ;;  %v1784_v34 = vmul.f32 -1.442695, %v894_v27 }
 0x865   : > { %2377 = vtanh.f32 %v1047_v30  ;;  %v1795_v35 = vmul.f32 -1.442695, %v1047_v30 }
 0x866   : > { %2379 = vpow2.f32 %v1784_v34 }
 0x867   : > { %2381 = vpow2.f32 %v1795_v35 }
 0x86e   : > { %v2376_v32 = vpop.eup %2375 }
 0x86f   : > { %v2378_v33 = vpop.eup %2377  ;;  %906 = vrot.lane.b32.xlu1 %v2376_v32, %s2822_s24 }
 0x870   : > { %1059 = vrot.lane.b32.xlu0 %v2378_v33, %s2822_s24  ;;  %v2380_v36 = vpop.eup %2379 }
 0x871   : > { %v2382_v37 = vpop.eup %2381  ;;  %v900_v38 = vadd.f32 1.0, %v2380_v36 }
 0x872   : > { %v1053_v39 = vadd.f32 1.0, %v2382_v37 }
 0x873   : > { %2383 = vrcp.f32 %v900_v38 }
 0x874   : > { %2385 = vrcp.f32 %v1053_v39 }
 0x87d   : > { %v2384_v40 = vpop.eup %2383 }
 0x87e   : > { %v2386_v42 = vpop.eup %2385  ;;  %v904_v46 = vmul.f32 %v2766_v63, %v2384_v40 }
 0x87f   : > { %v1057_v48 = vmul.f32 %v2758_v57, %v2386_v42 }
 0x8e1   : > { %v907_v41 = vpop.permute.xlu1 %906 }
 0x8e2   : > { %v909_v43 = vmul.f32 %v2384_v40, %v907_v41  ;;  %v1060_v44 = vpop.permute.xlu0 %1059 }
 0x8e3   : > { %v1062_v45 = vmul.f32 %v2386_v42, %v1060_v44 }
 0x8e4   : > { %911 = vrot.lane.b32.xlu1 %v909_v43, %s2820_s21 }
 0x8e5   : > { %1064 = vrot.lane.b32.xlu0 %v1062_v45, %s2820_s21 }
 0x956   : > { %v912_v47 = vpop.permute.xlu1 %911 }
 0x957   : > { %v914_v63 = vadd.f32 %v912_v47, %v904_v46   ;;  %v1065_v49 = vpop.permute.xlu0 %1064 }
 0x958   : > { %v1067_v57 = vadd.f32 %v1065_v49, %v1057_v48  }
 0x959   : > { %2387 = vtanh.f32 %v914_v63 }
 0x95a   : > { %2389 = vtanh.f32 %v1067_v57 }
 0x963   : > { %v2388_v50 = vpop.eup %2387 }
 0x964   : > { %v2390_v51 = vpop.eup %2389  ;;  %917 = vrot.lane.b32.xlu1 %v2388_v50, %s2822_s24 }
 0x965   : > { %1070 = vrot.lane.b32.xlu0 %v2390_v51, %s2822_s24 }
 0x9d6   : > { %v918_v52 = vpop.permute.xlu1 %917 }
 0x9d7   : > { %v920_v0 = vmul.f32 %v2384_v40, %v918_v52   ;;  %v1071_v53 = vpop.permute.xlu0 %1070 }
 0x9d8   : > { %v1073_v62 = vmul.f32 %v2386_v42, %v1071_v53  }
 0x9d9   : > { %1075 = vrot.lane.b32.xlu1 %v920_v0, %s2820_s21 }
 0x9da   : > { %1082 = vrot.lane.b32.xlu0 %v1073_v62, %s2820_s21 }
 0xa47   :  { %758 = sbr.rel (!%p756_p2) target bundleno = 1801 (0x709), region = 227 }
 0xa4b   : > { %v1076_v54 = vpop.permute.xlu1 %1075 }
 0xa4c   : > { %1080 = vst.msk [vmem:[%s1078_s25] sm:$0x3] %vm413_vm3, %v1076_v54  ;;  %v1083_v55 = vpop.permute.xlu0 %1082 }
 0xa4d   : > { %1086 = vst.msk [vmem:[%s1085_s7] sm:$0x3] %vm413_vm3, %v1083_v55 }
 0xa4e LB: > { %v1131_v57 = vld [vmem:[#allocation19] sm:$0xff]  ;;  %v1132_v63 = vld [vmem:[#allocation19 + $0x8] sm:$0xff]  ;;  %v2823_v0 = vmov 0.0|0.0   ;;  %v1133_v4 = vld [vmem:[#allocation19 + $0x10] sm:$0xff]  ;;  %s1097_s10 = ssub.s32 3, %s2794_s9  ;;  %s1833_s12 = sshll.u32 %s2794_s9, 2  ;;  %s2794_s9 = sphi %s3366_s9, %s1092_s9   ;;  %v2790_v59 = vphi %v3364_v59, %v1253_v59   ;;  %v2786_v60 = vphi %v3362_v60, %v1247_v60   ;;  %v2782_v58 = vphi %v3360_v58, %v1406_v58   ;;  %v2778_v56 = vphi %v3358_v56, %v1400_v56  }
 0xa4f   : > { %v1284_v62 = vld [vmem:[#allocation21] sm:$0xff]  ;;  %2037 = vmatprep.subr.bf16.mxu0 %v2823_v0  ;;  %v2038_v2 = vpack.c.bf16 %v1132_v63, %v1131_v57  ;;  %2067 = vmatprep.subr.bf16.mxu1 %v2823_v0  ;;  %v1285_v3 = vld [vmem:[#allocation21 + $0x8] sm:$0xff]  ;;  %v1134_v5 = vld [vmem:[#allocation19 + $0x18] sm:$0xff]  ;;  %s1102_s3 = scalar_lea.vmem [#allocation7], %s1833_s12  ;;  %s3389_s26 = sshll.u32 %s1097_s10, 2 }
 0xa50   : > { %v2068_v6 = vpack.c.bf16 %v1285_v3, %v1284_v62  ;;  %v1286_v7 = vld [vmem:[#allocation21 + $0x10] sm:$0xff]  ;;  %v1287_v8 = vld [vmem:[#allocation21 + $0x18] sm:$0xff]  ;;  %v2041_v9 = vpack.c.bf16 %v1134_v5, %v1133_v4  ;;  %v1135_v10 = vld [vmem:[#allocation19 + $0x20] sm:$0xff]  ;;  %s3392_s27 = scalar_lea.vmem [#allocation6], %s1833_s12  ;;  %s1258_s23 = scalar_lea.vmem [#allocation7], %s3389_s26 }
 0xa51   : > { %2039 = vmatpush1.bf16.msra.mxu0 %v2038_v2  ;;  %v2071_v13 = vpack.c.bf16 %v1287_v8, %v1286_v7  ;;  %v1136_v14 = vld [vmem:[#allocation19 + $0x28] sm:$0xff]  ;;  %v1288_v16 = vld [vmem:[#allocation21 + $0x20] sm:$0xff]  ;;  %s1256_s6 = scalar_lea.vmem [#allocation6], %s3389_s26  ;;  %v1137_v23 = vld [vmem:[#allocation19 + $0x30] sm:$0xff]  ;;  %s2824_s8 = smov 32  }
 0xa52   : > { %2069 = vmatpush1.bf16.msra.mxu1 %v2068_v6  ;;  %2040 = vmatprep.subr.bf16.mxu0 %v2823_v0  ;;  %v1289_v17 = vld [vmem:[#allocation21 + $0x28] sm:$0xff]  ;;  %v2044_v21 = vpack.c.bf16 %v1136_v14, %v1135_v10  ;;  %v1138_v24 = vld [vmem:[#allocation19 + $0x38] sm:$0xff]  ;;  %s2825_s28 = smov 96   ;;  %v1290_v26 = vld [vmem:[#allocation21 + $0x30] sm:$0xff]  ;;  %s2826_s1 = smov 64  }
 0xa53   : > { %v1800_v15 = vld [vmem:[%s3392_s27 + $0x2] sm:$0x3]  ;;  %2070 = vmatprep.subr.bf16.mxu1 %v2823_v0  ;;  %v2074_v22 = vpack.c.bf16 %v1289_v17, %v1288_v16  ;;  %v1291_v27 = vld [vmem:[#allocation21 + $0x38] sm:$0xff]  ;;  %v2047_v28 = vpack.c.bf16 %v1138_v24, %v1137_v23  ;;  %v1139_v30 = vld [vmem:[#allocation19 + $0x40] sm:$0xff]  ;;  %s1796_s4 = sshll.u32 %s2794_s9, 1  ;;  %s1807_s24 = sshll.u32 %s1097_s10, 1 }
 0xa54   : > { %v1103_v11 = vld [vmem:[%s1102_s3] sm:$0x3]  ;;  %v1803_v12 = vld [vmem:[%s1102_s3 + $0x2] sm:$0x3]  ;;  %v2077_v29 = vpack.c.bf16 %v1291_v27, %v1290_v26  ;;  %v1292_v32 = vld [vmem:[#allocation21 + $0x40] sm:$0xff]  ;;  %s1411_s11 = scalar_lea.vmem [#allocation8], %s1796_s4 }
 0xa55   : > { %v1259_v18 = vld [vmem:[%s1258_s23] sm:$0x3]  ;;  %v1814_v1 = vld [vmem:[%s1258_s23 + $0x2] sm:$0x3]  ;;  %2042 = vmatpush1.bf16.msra.mxu0 %v2041_v9  ;;  %v1141_v36 = vld [vmem:[#allocation19 + $0x50] sm:$0xff]  ;;  %s1418_s5 = scalar_lea.vmem [#allocation9], %s1807_s24 }
 0xa56   : > { %v1811_v61 = vld [vmem:[%s1256_s6 + $0x2] sm:$0x3]  ;;  %v2391_v19 = vpack.i.bf16 %v1259_v18, %v1103_v11  ;;  %v2401_v20 = vpack.i.bf16 %v1814_v1, %v1803_v12  ;;  %2072 = vmatpush1.bf16.msra.mxu1 %v2071_v13  ;;  %2043 = vmatprep.subr.bf16.mxu0 %v2823_v0  ;;  %v1142_v37 = vld [vmem:[#allocation19 + $0x58] sm:$0xff]  ;;  %v1294_v38 = vld [vmem:[#allocation21 + $0x50] sm:$0xff]  ;;  %s1092_s9 = sadd.s32 1, %s2794_s9  }
 0xa57   : > { %v2396_v25 = vpack.i.bf16 %v1811_v61, %v1800_v15  ;;  %2073 = vmatprep.subr.bf16.mxu1 %v2823_v0  ;;  %v1140_v31 = vld [vmem:[#allocation19 + $0x48] sm:$0xff]  ;;  %v1295_v39 = vld [vmem:[#allocation21 + $0x58] sm:$0xff]  ;;  %v2053_v40 = vpack.c.bf16 %v1142_v37, %v1141_v36  ;;  %v1143_v42 = vld [vmem:[#allocation19 + $0x60] sm:$0xff]  ;;  %p1089_p3 = scmp.ge.s32.totalorder %s1092_s9, 4  }
 0xa58   : > { %2392 = vrot.lane.b32.xlu0 %v2391_v19, %s2824_s8  ;;  %2402 = vrot.lane.b32.xlu1 %v2401_v20, %s2825_s28  ;;  %v1293_v33 = vld [vmem:[#allocation21 + $0x48] sm:$0xff]  ;;  %v2050_v34 = vpack.c.bf16 %v1140_v31, %v1139_v30  ;;  %v2083_v41 = vpack.c.bf16 %v1295_v39, %v1294_v38  ;;  %v1296_v44 = vld [vmem:[#allocation21 + $0x60] sm:$0xff]  ;;  %v1145_v48 = vld [vmem:[#allocation19 + $0x70] sm:$0xff]  ;;  %s3465_s15 = smov (%p1089_p3), 0  }
 0xa59   : > { %2045 = vmatpush1.bf16.msra.mxu0 %v2044_v21  ;;  %v2080_v35 = vpack.c.bf16 %v1293_v33, %v1292_v32  ;;  %v1144_v43 = vld [vmem:[#allocation19 + $0x68] sm:$0xff]  ;;  %v1146_v49 = vld [vmem:[#allocation19 + $0x78] sm:$0xff]  ;;  %v1298_v50 = vld [vmem:[#allocation21 + $0x70] sm:$0xff] }
 0xa5a   : > { %2075 = vmatpush1.bf16.msra.mxu1 %v2074_v22  ;;  %2046 = vmatprep.subr.bf16.mxu0 %v2823_v0  ;;  %v1297_v45 = vld [vmem:[#allocation21 + $0x68] sm:$0xff]  ;;  %v2056_v46 = vpack.c.bf16 %v1144_v43, %v1143_v42  ;;  %v1299_v51 = vld [vmem:[#allocation21 + $0x78] sm:$0xff]  ;;  %v2059_v52 = vpack.c.bf16 %v1146_v49, %v1145_v48  ;;  %v1147_v54 = vld [vmem:[#allocation19 + $0x80] sm:$0xff] }
 0xa5b   : > { %2076 = vmatprep.subr.bf16.mxu1 %v2823_v0  ;;  %v2086_v47 = vpack.c.bf16 %v1297_v45, %v1296_v44  ;;  %v2089_v53 = vpack.c.bf16 %v1299_v51, %v1298_v50  ;;  %v1148_v55 = vld [vmem:[#allocation19 + $0x88] sm:$0xff]  ;;  %v1149_v62 = vld [vmem:[#allocation19 + $0x90] sm:$0xff]  ;;  %v1150_v2 = vld [vmem:[#allocation19 + $0x98] sm:$0xff] }
 0xa5c   : > { %2397 = vrot.lane.b32.xlu0 %v2396_v25, %s2826_s1  ;;  %1129 = vrot.lane.b32.xlu1 %v2790_v59, %s2824_s8  ;;  %v1301_v59 = vld [vmem:[#allocation21 + $0x88] sm:$0xff]  ;;  %v2062_v57 = vpack.c.bf16 %v1148_v55, %v1147_v54  ;;  %v1302_v3 = vld [vmem:[#allocation21 + $0x90] sm:$0xff]  ;;  %v1303_v4 = vld [vmem:[#allocation21 + $0x98] sm:$0xff]  ;;  %v2065_v5 = vpack.c.bf16 %v1150_v2, %v1149_v62 }
 0xa5d   : > { %2048 = vmatpush1.bf16.msra.mxu0 %v2047_v28  ;;  %v2095_v6 = vpack.c.bf16 %v1303_v4, %v1302_v3  ;;  %v1101_v11 = vld [vmem:[%s3392_s27] sm:$0x3] }
 0xa5e   : > { %2078 = vmatpush1.bf16.msra.mxu1 %v2077_v29  ;;  %2049 = vmatprep.subr.bf16.mxu0 %v2823_v0  ;;  %v1257_v12 = vld [vmem:[%s1256_s6] sm:$0x3] }
 0xa5f   : > { %2079 = vmatprep.subr.bf16.mxu1 %v2823_v0  ;;  %v1804_v23 = vld [vmem:[%s3549_s14] ss:$0 sm:$0xff] }
 0xa60   : > { %1282 = vrot.lane.b32.xlu0 %v2782_v58, %s2824_s8  ;;  %v1300_v58 = vld [vmem:[#allocation21 + $0x80] sm:$0xff]  ;;  %v1815_v24 = vld [vmem:[%s3551_s16] ss:$0 sm:$0xff] }
 0xa61   : > { %2051 = vmatpush1.bf16.msra.mxu0 %v2050_v34  ;;  %v2092_v63 = vpack.c.bf16 %v1301_v59, %v1300_v58 }
 0xa62   : > { %2081 = vmatpush1.bf16.msra.mxu1 %v2080_v35  ;;  %2052 = vmatprep.subr.bf16.mxu0 %v2823_v0 }
 0xa63   : > { %2082 = vmatprep.subr.bf16.mxu1 %v2823_v0 }
 0xa65   : > { %2054 = vmatpush1.bf16.msra.mxu0 %v2053_v40 }
 0xa66   : > { %2084 = vmatpush1.bf16.msra.mxu1 %v2083_v41  ;;  %2055 = vmatprep.subr.bf16.mxu0 %v2823_v0 }
 0xa67   : > { %2085 = vmatprep.subr.bf16.mxu1 %v2823_v0 }
 0xa69   : > { %2057 = vmatpush1.bf16.msra.mxu0 %v2056_v46 }
 0xa6a   : > { %2087 = vmatpush1.bf16.msra.mxu1 %v2086_v47  ;;  %2058 = vmatprep.subr.bf16.mxu0 %v2823_v0 }
 0xa6b   : > { %2088 = vmatprep.subr.bf16.mxu1 %v2823_v0 }
 0xa6d   : > { %2060 = vmatpush1.bf16.msra.mxu0 %v2059_v52 }
 0xa6e   : > { %2090 = vmatpush1.bf16.msra.mxu1 %v2089_v53  ;;  %2061 = vmatprep.subr.bf16.mxu0 %v2823_v0 }
 0xa6f   : > { %2091 = vmatprep.subr.bf16.mxu1 %v2823_v0 }
 0xa71   : > { %2063 = vmatpush1.bf16.msra.mxu0 %v2062_v57 }
 0xa72   : > { %2093 = vmatpush1.bf16.msra.mxu1 %v2092_v63  ;;  %2064 = vmatprep.subr.bf16.mxu0 %v2823_v0 }
 0xa73   : > { %2094 = vmatprep.subr.bf16.mxu1 %v2823_v0 }
 0xa75   : > { %2066 = vmatpush1.bf16.msra.mxu0 %v2065_v5 }
 0xa76   : > { %2096 = vmatpush1.bf16.msra.mxu1 %v2095_v6 }
 0xaca   : > { %v2393_v7 = vpop.permute.xlu0 %2392  ;;  %v2403_v8 = vpop.permute.xlu1 %2402 }
 0xacb   : > { %v2395_v9 = vunpack.i.h.bf16 %v2393_v7  ;;  %v2394_v10 = vunpack.i.l.bf16 %v2393_v7  ;;  %v2405_v13 = vunpack.i.h.bf16 %v2403_v8  ;;  %v2404_v14 = vunpack.i.l.bf16 %v2403_v8 }
 0xacd   : > { %v1123_v1 = vsel %vm456_vm4, %v1101_v11, %v2394_v10  ;;  %v1278_v0 = vsel %vm456_vm4, %v1257_v12, %v2395_v9 }
 0xace   : > { %v2398_v15 = vpop.permute.xlu0 %2397  ;;  %v1130_v16 = vpop.permute.xlu1 %1129 }
 0xacf   : > { %v2400_v17 = vunpack.i.h.bf16 %v2398_v15  ;;  %v2399_v18 = vunpack.i.l.bf16 %v2398_v15  ;;  %1805 = vmatprep.mubr.msk.f32.mxu0 %vm456_vm4, %v1130_v16 }
 0xad1   : > { %v1125_v61 = vsel %vm458_vm5, %v1123_v1, %v2399_v18  ;;  %v1279_v19 = vsel %vm458_vm5, %v1278_v0, %v2400_v17 }
 0xad2   : > { %v1283_v20 = vpop.permute.xlu0 %1282  ;;  %v1127_v21 = vsel %vm460_vm6, %v1125_v61, %v2404_v14  ;;  %v1280_v22 = vsel %vm460_vm6, %v1279_v19, %v2405_v13 }
 0xad3   : > { %1225 = vmatmul.mubr.f32.vlgmr.msra.gmra.mrb[0].mxu0 %v1127_v21  ;;  %1816 = vmatprep.mubr.msk.f32.mxu1 %vm456_vm4, %v1283_v20 }
 0xad4   : > { %1378 = vmatmul.mubr.f32.vlgmr.msra.gmra.mrb[0].mxu1 %v1280_v22 }
 0xba6   : > { %v1226_v25 = vpop.f32.mrb[0].mxu0 }
 0xba7   : > { %v1227_v26 = vadd.f32 %v1804_v23, %v1226_v25  ;;  %v1228_v27 = vpop.f32.mrb[1].mxu0  ;;  %v1379_v28 = vpop.f32.mrb[0].mxu1 }
 0xba8   : > { %v1380_v29 = vadd.f32 %v1815_v24, %v1379_v28  ;;  %v1381_v30 = vpop.f32.mrb[1].mxu1 }
 0xba9   : > { %2406 = vtanh.f32 %v1227_v26  ;;  %v1806_v33 = vmul.f32 -1.442695, %v1227_v26 }
 0xbaa   : > { %2408 = vtanh.f32 %v1380_v29  ;;  %v1817_v34 = vmul.f32 -1.442695, %v1380_v29 }
 0xbab   : > { %2410 = vpow2.f32 %v1806_v33 }
 0xbac   : > { %2412 = vpow2.f32 %v1817_v34 }
 0xbb3   : > { %v2407_v31 = vpop.eup %2406 }
 0xbb4   : > { %v2409_v32 = vpop.eup %2408  ;;  %1239 = vrot.lane.b32.xlu1 %v2407_v31, %s2826_s1 }
 0xbb5   : > { %1392 = vrot.lane.b32.xlu0 %v2409_v32, %s2826_s1  ;;  %v2411_v35 = vpop.eup %2410 }
 0xbb6   : > { %v2413_v36 = vpop.eup %2412  ;;  %v1233_v37 = vadd.f32 1.0, %v2411_v35 }
 0xbb7   : > { %v1386_v38 = vadd.f32 1.0, %v2413_v36 }
 0xbb8   : > { %2414 = vrcp.f32 %v1233_v37 }
 0xbb9   : > { %2416 = vrcp.f32 %v1386_v38 }
 0xbc2   : > { %v2415_v39 = vpop.eup %2414 }
 0xbc3   : > { %v2417_v41 = vpop.eup %2416  ;;  %v1237_v45 = vmul.f32 %v2786_v60, %v2415_v39 }
 0xbc4   : > { %v1390_v47 = vmul.f32 %v2778_v56, %v2417_v41 }
 0xc26   : > { %v1240_v40 = vpop.permute.xlu1 %1239 }
 0xc27   : > { %v1242_v42 = vmul.f32 %v2415_v39, %v1240_v40  ;;  %v1393_v43 = vpop.permute.xlu0 %1392 }
 0xc28   : > { %v1395_v44 = vmul.f32 %v2417_v41, %v1393_v43 }
 0xc29   : > { %1244 = vrot.lane.b32.xlu1 %v1242_v42, %s2824_s8 }
 0xc2a   : > { %1397 = vrot.lane.b32.xlu0 %v1395_v44, %s2824_s8 }
 0xc9b   : > { %v1245_v46 = vpop.permute.xlu1 %1244 }
 0xc9c   : > { %v1247_v60 = vadd.f32 %v1245_v46, %v1237_v45   ;;  %v1398_v48 = vpop.permute.xlu0 %1397 }
 0xc9d   : > { %v1400_v56 = vadd.f32 %v1398_v48, %v1390_v47  }
 0xc9e   : > { %2418 = vtanh.f32 %v1247_v60 }
 0xc9f   : > { %2420 = vtanh.f32 %v1400_v56 }
 0xca8   : > { %v2419_v49 = vpop.eup %2418 }
 0xca9   : > { %v2421_v50 = vpop.eup %2420  ;;  %1250 = vrot.lane.b32.xlu1 %v2419_v49, %s2826_s1 }
 0xcaa   : > { %1403 = vrot.lane.b32.xlu0 %v2421_v50, %s2826_s1 }
 0xd1b   : > { %v1251_v51 = vpop.permute.xlu1 %1250 }
 0xd1c   : > { %v1253_v59 = vmul.f32 %v2415_v39, %v1251_v51   ;;  %v1404_v52 = vpop.permute.xlu0 %1403 }
 0xd1d   : > { %v1406_v58 = vmul.f32 %v2417_v41, %v1404_v52  }
 0xd1e   : > { %1408 = vrot.lane.b32.xlu1 %v1253_v59, %s2824_s8 }
 0xd1f   : > { %1415 = vrot.lane.b32.xlu0 %v1406_v58, %s2824_s8 }
 0xd8c   :  { %1091 = sbr.rel (!%p1089_p3) target bundleno = 2638 (0xa4e), region = 238 }
 0xd90   : > { %v1409_v53 = vpop.permute.xlu1 %1408 }
 0xd91   : > { %1413 = vst.msk [vmem:[%s1411_s11] sm:$0x3] %vm413_vm3, %v1409_v53  ;;  %v1416_v54 = vpop.permute.xlu0 %1415 }
 0xd92   : > { %1419 = vst.msk [vmem:[%s1418_s5] sm:$0x3] %vm413_vm3, %v1416_v54 }
 0xd93 LB: > { %v1437_v55 = vld [vmem:[%s3552_s17] sm:$0xff]  ;;  %v1438_v57 = vld [vmem:[%s3552_s17 + $0x8] sm:$0xff]  ;;  %v1439_v59 = vld [vmem:[%s3552_s17 + $0x10] sm:$0xff]  ;;  %v2827_v56 = vmov 0.0|0.0   ;;  %s3483_s9 = sshll.u32 %s2798_s15, 1  ;;  %vm2828_vm7 = vmmov 0   ;;  %s2798_s15 = sphi %s3465_s15, %s1425_s15  }
 0xd94   : > { %2097 = vmatprep.subr.bf16.mxu0 %v2827_v56  ;;  %v2098_v60 = vpack.c.bf16 %v1438_v57, %v1437_v55  ;;  %v1440_v58 = vld [vmem:[%s3552_s17 + $0x18] sm:$0xff]  ;;  %v2829_v63 = vmov 0.0   ;;  %s1429_s12 = scalar_lea.vmem [#allocation9], %s3483_s9  ;;  %v1441_v3 = vld [vmem:[%s3552_s17 + $0x20] sm:$0xff]  ;;  %v1442_v4 = vld [vmem:[%s3552_s17 + $0x28] sm:$0xff]  ;;  %s2830_s6 = smov 32  }
 0xd95   : > { %1902 = vmatprep.mubr.msk.f32.mxu0 %vm2828_vm7, %v2829_v63  ;;  %v2101_v62 = vpack.c.bf16 %v1440_v58, %v1439_v59  ;;  %v2104_v5 = vpack.c.bf16 %v1442_v4, %v1441_v3  ;;  %v1443_v6 = vld [vmem:[%s3552_s17 + $0x30] sm:$0xff]  ;;  %v1444_v7 = vld [vmem:[%s3552_s17 + $0x38] sm:$0xff]  ;;  %s1427_s0 = scalar_lea.vmem [#allocation8], %s3483_s9  ;;  %v1819_v12 = vld [vmem:[%s3553_s18] ss:$0 sm:$0xff]  ;;  %s1526_s4 = scalar_lea.vmem [#allocation22], %s3483_s9 }
 0xd96   : > { %2099 = vmatpush3.bf16.msra.mxu0 %v2098_v60  ;;  %v2107_v8 = vpack.c.bf16 %v1444_v7, %v1443_v6  ;;  %s2831_s24 = smov 96   ;;  %s1533_s11 = scalar_lea.vmem [#allocation23], %s3483_s9 }
 0xd97   : > { %2100 = vmatprep.subr.bf16.mxu0 %v2827_v56  ;;  %s1425_s15 = sadd.s32 1, %s2798_s15  }
 0xd98   : > { %v1428_v9 = vld [vmem:[%s1427_s0] sm:$0x3]  ;;  %p1422_p4 = scmp.ge.s32.totalorder %s1425_s15, 4  }
 0xd99   : > { %v1430_v2 = vld [vmem:[%s1429_s12] sm:$0x3]  ;;  %s2832_s5 = smov (%p1422_p4), [#allocation22]  }
 0xd9a   : > { %1432 = vrot.lane.b32.xlu0 %v1430_v2, %s2830_s6  ;;  %2102 = vmatpush3.bf16.msra.mxu0 %v2101_v62  ;;  %s1540_s30 = sshll.u32 (%p1422_p4), %s2832_s5, 4  ;;  %s1541_s30 = int_to_ptr.vmem [resolvable:$true] %s1540_s30 }
 0xd9b   : > { %2103 = vmatprep.subr.bf16.mxu0 %v2827_v56  ;;  %s2576_s29 = scalar_lea.vmem (%p1422_p4), %s1541_s30, 128  ;;  %p2581_p6 = scmp.lt.s32.totalorder (%p1422_p4), %s1541_s30, %s1541_s30 }
 0xd9c   :  { %p2577_p5 = scmp.ne.s32.totalorder (%p1422_p4), %s1541_s30, %s2576_s29  ;;  %p2582_p7 = scmp.lt.s32.totalorder (%p1422_p4), %s2576_s29, %s2576_s29 }
 0xd9e   : > { %2105 = vmatpush3.bf16.msra.mxu0 %v2104_v5  ;;  %p2583_p8 = por (%p1422_p4), %p2582_p7, %p2581_p6 }
 0xd9f   : > { %2106 = vmatprep.subr.bf16.mxu0 %v2827_v56 }
 0xda0   :  { %p2584_p9 = pnand (%p1422_p4), %p2583_p8, %p2577_p5 }
 0xda2   : > { %2108 = vmatpush3.bf16.msra.mxu0 %v2107_v8 }
 0xe0c   : > { %v1433_v10 = vpop.permute.xlu0 %1432 }
 0xe0d   : > { %v1436_v11 = vsel %vm456_vm4, %v1428_v9, %v1433_v10 }
 0xe0e   : > { %1903 = vmatmul.mubr.msk.f32.vlgmr.msra.gmra.mrb[0].mxu0 %vm458_vm5, %v1436_v11 }
 0xee1   : > { %v1522_v13 = vpop.f32.mrb[0].mxu0 }
 0xee2   : > { %v1523_v14 = vadd.f32 %v1819_v12, %v1522_v13  ;;  %v1904_v15 = vpop.f32.mrb[1].mxu0 }
 0xee4   : > { %1528 = vst.msk [vmem:[%s1526_s4] sm:$0x3] %vm413_vm3, %v1523_v14  ;;  %1530 = vrot.lane.b32.xlu0 %v1523_v14, %s2831_s24 }
 0xf51   :  { %1424 = sbr.rel (!%p1422_p4) target bundleno = 3475 (0xd93), region = 249 }
 0xf56   : > { %v1531_v16 = vpop.permute.xlu0 %1530 }
 0xf57   : > { %1534 = vst.msk [vmem:[%s1533_s11] sm:$0x3] %vm413_vm3, %v1531_v16 }
 0xf58   :  { %2587 = shalt.err (!%p2584_p9)
}
 0xf59   :  { %s2588_s7 = scalar_lea.hbm %s3554_s19, 128 }
 0xf5a   :  { %p2589_p10 = scmp.ne.s32.totalorder %s3554_s19, %s2588_s7  ;;  %p2592_p11 = scmp.lt.u32.totalorder %s2588_s7, %s3554_s19 }
 0xf5c   :  { %p2594_p12 = pnand %p2592_p11, %p2589_p10 }
 0xf5e   :  { %2597 = shalt.err (!%p2594_p12)
}
 0xf5f   :  { %s2833_s17 = smov 32   ;;  %s2834_s18 = smov 2  }
 0xf60   :  { %1546 = dma.vmem_to_hbm [thread:$0]  %s1541_s30, 128, %s3554_s19, [#allocation12], %s2833_s17, %s2833_s17, %s2834_s18  }
 0xf61   :  { %s2835_s3 = smov [#allocation23]  }
 0xf62   :  { %s1552_s26 = sshll.u32 %s2835_s3, 4  ;;  %s1553_s26 = int_to_ptr.vmem [resolvable:$true] %s1552_s26 }
 0xf63   :  { %s2598_s27 = scalar_lea.vmem %s1553_s26, 128  ;;  %p2603_p0 = scmp.lt.s32.totalorder %s1553_s26, %s1553_s26 }
 0xf64   :  { %p2599_p13 = scmp.ne.s32.totalorder %s1553_s26, %s2598_s27  ;;  %p2604_p1 = scmp.lt.s32.totalorder %s2598_s27, %s2598_s27 }
 0xf66   :  { %p2605_p2 = por %p2604_p1, %p2603_p0 }
 0xf68   :  { %p2606_p3 = pnand %p2605_p2, %p2599_p13 }
 0xf6a   :  { %2609 = shalt.err (!%p2606_p3)
}
 0xf6b   :  { %s2610_s8 = scalar_lea.hbm %s3555_s20, 128 }
 0xf6c   :  { %p2611_p4 = scmp.ne.s32.totalorder %s3555_s20, %s2610_s8  ;;  %p2614_p5 = scmp.lt.u32.totalorder %s2610_s8, %s3555_s20 }
 0xf6e   :  { %p2616_p6 = pnand %p2614_p5, %p2611_p4 }
 0xf70   :  { %2619 = shalt.err (!%p2616_p6)
}
 0xf71   :  { %1558 = dma.vmem_to_hbm [thread:$0]  %s1553_s26, 128, %s3555_s20, [#allocation24], %s2833_s17, %s2833_s17, %s2834_s18  }
 0xf72   :  { %2712 = dma.done.wait [#allocation12], 128  }
 0xf73   :  { %2713 = vsyncadd [#allocation12], 4294967168 }
 0xf74   :  { %2714 = dma.done.wait [#allocation24], 128  }
 0xf75   :  { %2715 = vsyncadd [#allocation24], 4294967168 }
 0xf76   :  { %1565 = vsyncpa [#allocation11], 1 }
 0xf77   :  { %1566 = vsyncpa [#allocation14], 1 }
 0xf78   :  { %1567 = vsyncpa [#allocation17], 1 }
 0xf79   :  { %1568 = vsyncpa [#allocation20], 1 }
 0xf7a   :  { %1569 = vsyncpa [#allocation12], 1 }
 0xf7b   :  { %1570 = vsyncpa [#allocation24], 1 }

</bundles_post_ra>
